<compile_context>
chip_gen: v7x
topology: tpu7x:2x2x1
jax: 0.10.0
libtpu: 0.0.40
codegen_flags: <defaults>
</compile_context>

<pallas_src>
import jax
import jax.numpy as jnp
from jax import lax
from jax.experimental import pallas as pl
from jax.experimental.pallas import tpu as pltpu

# ---- small synthetic CLIP-text config (stand-ins for the ViT-L/14 text tower) ----
B = 2            # batch (= one batch tile here)
SEQ = 8          # stand-in for max_length = 77 (at real size pad 77 -> 80)
D_MODEL = 32     # stand-in for transformer width 768
N_HEADS = 4
HEAD_DIM = D_MODEL // N_HEADS
D_FF = 4 * D_MODEL
EMBED_DIM = 32   # stand-in for CLIP embed dim 768
VOCAB = 64       # stand-in for vocab 49408
N_LAYERS = 2     # stand-in for 12 layers

_EPS = 1e-5
_NEG = -1e30     # additive causal-mask fill; scores stay f32 so this is safe


def _layernorm(v, w, b):
    mu = jnp.mean(v, axis=-1, keepdims=True)
    var = jnp.mean((v - mu) ** 2, axis=-1, keepdims=True)
    return (v - mu) * lax.rsqrt(var + _EPS) * w + b


# ----------------------------- fused Pallas kernel -----------------------------
def clip_text_tower_kernel(
        eot_ref,              # SMEM (B,) int32  (scalar prefetch)
        x0_ref,               # (B, S, D) f32    token + positional embeddings
        ln1_w, ln1_b,         # (1, D) f32
        w_qkv, b_qkv,         # (D, 3D) bf16 / (1, 3D) f32 (Q slab pre-scaled)
        w_out, b_out,         # (D, D) bf16 / (1, D) f32
        ln2_w, ln2_b,         # (1, D) f32
        w_fc, b_fc,           # (D, D_FF) bf16 / (1, D_FF) f32
        w_pr, b_pr,           # (D_FF, D) bf16 / (1, D) f32
        lnf_w, lnf_b,         # (1, D) f32
        t_proj,               # (D, E) bf16
        z_ref,                # (B, E) f32 output
        x_sc, mask_sc):       # VMEM scratch: (B, S, D) f32, (S, S) f32
    bf16, f32 = jnp.bfloat16, jnp.float32

    # program_id / num_programs hoisted OUT of any pl.when body (interpret-safe).
    l = pl.program_id(0)
    last = pl.num_programs(0) - 1

    @pl.when(l == 0)
    def _init():
        x_sc[...] = x0_ref[...]
        row = lax.broadcasted_iota(jnp.int32, (SEQ, SEQ), 0)
        col = lax.broadcasted_iota(jnp.int32, (SEQ, SEQ), 1)
        mask_sc[...] = jnp.where(col <= row, 0.0, _NEG).astype(f32)

    x = x_sc[...]                                                     # (B, S, D) f32

    # ---------------- attention branch (pre-LN) ----------------
    h = _layernorm(x, ln1_w[...], ln1_b[...])
    h2d = h.reshape(B * SEQ, D_MODEL).astype(bf16)
    # single fused QKV matmul: (B*S, D) @ (D, 3D); 1/sqrt(HD) folded into Wq host-side
    qkv = jnp.dot(h2d, w_qkv[...], preferred_element_type=f32) + b_qkv[...]
    qkv = qkv.reshape(B, SEQ, 3 * D_MODEL)
    q = qkv[:, :, 0:D_MODEL]
    k = qkv[:, :, D_MODEL:2 * D_MODEL]
    v = qkv[:, :, 2 * D_MODEL:3 * D_MODEL]                            # (B, S, D) each

    def split_heads(t):   # (B, S, H*HD) head-major -> (B*H, S, HD) via static lane slices
        th = jnp.stack([t[:, :, i * HEAD_DIM:(i + 1) * HEAD_DIM]
                        for i in range(N_HEADS)], axis=1)             # (B, H, S, HD)
        return th.reshape(B * N_HEADS, SEQ, HEAD_DIM)

    qh = split_heads(q).astype(bf16)
    kh = split_heads(k).astype(bf16)
    vh = split_heads(v).astype(bf16)

    # per-head attention is <3% of layer FLOPs; keep it simple (single batch dim)
    s = jnp.einsum('nqd,nkd->nqk', qh, kh, preferred_element_type=f32)  # (B*H, S, S)
    s = s + mask_sc[...][None]                                          # causal mask (f32)
    m = jnp.max(s, axis=-1, keepdims=True)
    e = jnp.exp(s - m)
    p = e / jnp.sum(e, axis=-1, keepdims=True)                          # exact divide
    ctx = jnp.einsum('nqk,nkd->nqd', p.astype(bf16), vh,
                     preferred_element_type=f32)                        # (B*H, S, HD)

    # merge heads back into the lane dim -> ONE (B*S, D) @ (D, D) output projection
    ctx = ctx.reshape(B, N_HEADS, SEQ, HEAD_DIM)
    ctx_m = jnp.concatenate([ctx[:, i] for i in range(N_HEADS)], axis=-1)  # (B, S, D)
    attn = jnp.dot(ctx_m.reshape(B * SEQ, D_MODEL).astype(bf16), w_out[...],
                   preferred_element_type=f32) + b_out[...]
    x = x + attn.reshape(B, SEQ, D_MODEL)

    # ---------------- MLP branch (QuickGELU) ----------------
    h2 = _layernorm(x, ln2_w[...], ln2_b[...])
    mff = jnp.dot(h2.reshape(B * SEQ, D_MODEL).astype(bf16), w_fc[...],
                  preferred_element_type=f32) + b_fc[...]
    mff = mff * jax.nn.sigmoid(1.702 * mff)                             # QuickGELU
    out = jnp.dot(mff.astype(bf16), w_pr[...],
                  preferred_element_type=f32) + b_pr[...]
    x_sc[...] = x + out.reshape(B, SEQ, D_MODEL)

    # --------- head fused into the last layer step ---------
    # ln_final is per-token, so applying it only to the gathered EOT rows is
    # numerically identical to applying it over the full sequence first.
    @pl.when(l == last)
    def _head():
        rows = [x_sc[b, pl.ds(eot_ref[b], 1), :] for b in range(B)]     # (1, D) each
        xe = jnp.concatenate(rows, axis=0)                               # (B, D)
        hf = _layernorm(xe, lnf_w[...], lnf_b[...])
        z = jnp.dot(hf.astype(bf16), t_proj[...],
                    preferred_element_type=f32)                          # (B, E)
        z = z * lax.rsqrt(jnp.sum(z * z, axis=-1, keepdims=True))        # normalize=True
        z_ref[...] = z


# ----------------------- parameters (deterministic, synthetic) -----------------
def init_params(key):
    f32, bf16 = jnp.float32, jnp.bfloat16

    def nrm(k, shape, std):
        return jax.random.normal(k, shape, f32) * std

    keys = iter(jax.random.split(key, 3 + 6 * N_LAYERS))
    tok_emb = nrm(next(keys), (VOCAB, D_MODEL), 0.02)
    pos_emb = nrm(next(keys), (SEQ, D_MODEL), 0.01)
    text_proj = nrm(next(keys), (D_MODEL, EMBED_DIM), D_MODEL ** -0.5)

    scale = HEAD_DIM ** -0.5
    wqkv, bqkv, wo, bo, w_fc, b_fc, w_pr, b_pr = ([] for _ in range(8))
    for _ in range(N_LAYERS):
        # PyTorch in_proj_weight is (3D, D).  Store the transposed (D, 3D) layout
        # with columns [q | k | v]; heads are head-major within each D-wide slab.
        # The 1/sqrt(HEAD_DIM) attention scale is folded into the Q slab here
        # (weights AND, for a real checkpoint, the q bias) -- free in-kernel.
        wq_t = nrm(next(keys), (D_MODEL, D_MODEL), 0.02) * scale
        wk_t = nrm(next(keys), (D_MODEL, D_MODEL), 0.02)
        wv_t = nrm(next(keys), (D_MODEL, D_MODEL), 0.02)
        wqkv.append(jnp.concatenate([wq_t, wk_t, wv_t], axis=1))        # (D, 3D)
        bqkv.append(jnp.zeros((1, 3 * D_MODEL), f32))                   # q-slice pre-scaled (zeros here)
        wo.append(nrm(next(keys), (D_MODEL, D_MODEL), 0.02))            # (H*HD head-major, D)
        bo.append(jnp.zeros((1, D_MODEL), f32))
        w_fc.append(nrm(next(keys), (D_MODEL, D_FF), 0.02))
        b_fc.append(jnp.zeros((1, D_FF), f32))
        w_pr.append(nrm(next(keys), (D_FF, D_MODEL), 0.02))
        b_pr.append(jnp.zeros((1, D_MODEL), f32))

    stk = lambda xs: jnp.stack(xs, axis=0)
    return {
        'tok_emb': tok_emb,
        'pos_emb': pos_emb,
        'ln1_w': jnp.ones((N_LAYERS, 1, D_MODEL), f32),
        'ln1_b': jnp.zeros((N_LAYERS, 1, D_MODEL), f32),
        # matmul weights in bf16 (MXU-native, halves the HBM weight stream);
        # biases / LayerNorm params stay f32.
        'wqkv': stk(wqkv).astype(bf16), 'bqkv': stk(bqkv),
        'wo': stk(wo).astype(bf16), 'bo': stk(bo),
        'ln2_w': jnp.ones((N_LAYERS, 1, D_MODEL), f32),
        'ln2_b': jnp.zeros((N_LAYERS, 1, D_MODEL), f32),
        'w_fc': stk(w_fc).astype(bf16), 'b_fc': stk(b_fc),
        'w_pr': stk(w_pr).astype(bf16), 'b_pr': stk(b_pr),
        'ln_final_w': jnp.ones((1, D_MODEL), f32),
        'ln_final_b': jnp.zeros((1, D_MODEL), f32),
        'text_proj': text_proj.astype(bf16),
    }


# ------------------------------- forward pass ----------------------------------
def frozen_clip_text_embedder_forward(tokens, params):
    """Equivalent of FrozenCLIPTextEmbedder.forward (normalize=True).

    tokens: int32 (B, SEQ) -- stand-in for clip.tokenize(text).
    returns: float32 (B, EMBED_DIM), unit L2 norm per row.
    """
    assert tokens.shape == (B, SEQ)
    # token + positional embedding (vocab gather kept as plain-JAX glue)
    x0 = params['tok_emb'][tokens] + params['pos_emb'][None, :, :]     # (B, S, D) f32
    # CLIP gathers the EOT token = argmax over token ids (EOT is the max vocab id)
    eot_idx = jnp.argmax(tokens, axis=-1).astype(jnp.int32)            # (B,)

    def stacked(*shape):                 # per-layer (L, ...) weight: pick layer l
        nd = len(shape)
        return pl.BlockSpec((None,) + tuple(shape), lambda l, eot: (l,) + (0,) * nd)

    def shared(*shape):                  # layer-independent parameter
        nd = len(shape)
        return pl.BlockSpec(tuple(shape), lambda l, eot: (0,) * nd)

    in_specs = [
        # constant block index across layers -> Pallas DMAs x0 only once
        pl.BlockSpec((B, SEQ, D_MODEL), lambda l, eot: (0, 0, 0)),       # x0 (whole batch tile)
        stacked(1, D_MODEL), stacked(1, D_MODEL),                        # ln1 w/b
        stacked(D_MODEL, 3 * D_MODEL), stacked(1, 3 * D_MODEL),          # fused qkv w/b (flat)
        stacked(D_MODEL, D_MODEL), stacked(1, D_MODEL),                  # out-proj w/b (flat)
        stacked(1, D_MODEL), stacked(1, D_MODEL),                        # ln2 w/b
        stacked(D_MODEL, D_FF), stacked(1, D_FF),                        # mlp fc w/b
        stacked(D_FF, D_MODEL), stacked(1, D_MODEL),                     # mlp proj w/b
        shared(1, D_MODEL), shared(1, D_MODEL),                          # ln_final w/b
        shared(D_MODEL, EMBED_DIM),                                      # text projection
    ]

    z = pl.pallas_call(
        clip_text_tower_kernel,
        out_shape=jax.ShapeDtypeStruct((B, EMBED_DIM), jnp.float32),
        grid_spec=pltpu.PrefetchScalarGridSpec(
            num_scalar_prefetch=1,
            grid=(N_LAYERS,),                 # layer outer; whole batch tile per step
            in_specs=in_specs,
            out_specs=pl.BlockSpec((B, EMBED_DIM), lambda l, eot: (0, 0)),
            scratch_shapes=[pltpu.VMEM((B, SEQ, D_MODEL), jnp.float32),  # resident activations
                            pltpu.VMEM((SEQ, SEQ), jnp.float32)],        # causal mask
        ),
        compiler_params=pltpu.CompilerParams(
            # single layer axis carries the VMEM-resident activation state.
            # TODO(synk): at real CLIP-L scale add a leading batch-tile axis
            # marked "parallel" (>= 8 samples per v7x core) so both TensorCores
            # amortize their own weight stream.
            dimension_semantics=("arbitrary",),
            # explicit headroom under the 64 MiB v7x per-TC VMEM ceiling;
            # raise toward ~96 MiB on v5e/v6e for bigger batch tiles / buffering
            vmem_limit_bytes=48 * 1024 * 1024),
    )(eot_idx, x0,
      params['ln1_w'], params['ln1_b'],
      params['wqkv'], params['bqkv'], params['wo'], params['bo'],
      params['ln2_w'], params['ln2_b'],
      params['w_fc'], params['b_fc'], params['w_pr'], params['b_pr'],
      params['ln_final_w'], params['ln_final_b'], params['text_proj'])
    return z


# --------------------------- pure-JAX reference --------------------------------
def reference_forward(tokens, params):
    f32 = jnp.float32
    x = params['tok_emb'][tokens] + params['pos_emb'][None, :, :]
    row = jnp.arange(SEQ)[:, None]
    col = jnp.arange(SEQ)[None, :]
    mask = jnp.where(col <= row, 0.0, _NEG).astype(f32)

    def ln(v, w, b):
        mu = v.mean(-1, keepdims=True)
        var = ((v - mu) ** 2).mean(-1, keepdims=True)
        return (v - mu) / jnp.sqrt(var + _EPS) * w + b

    def split(t):
        return t.reshape(B, SEQ, N_HEADS, HEAD_DIM).transpose(0, 2, 1, 3)

    for li in range(N_LAYERS):
        h = ln(x, params['ln1_w'][li], params['ln1_b'][li])
        qkv = h @ params['wqkv'][li].astype(f32) + params['bqkv'][li]
        q = qkv[..., :D_MODEL]
        k = qkv[..., D_MODEL:2 * D_MODEL]
        v = qkv[..., 2 * D_MODEL:]
        s = jnp.einsum('bhqd,bhkd->bhqk', split(q), split(k)) + mask
        p = jax.nn.softmax(s, axis=-1)
        ctx = jnp.einsum('bhqk,bhkd->bhqd', p, split(v))
        ctx = ctx.transpose(0, 2, 1, 3).reshape(B, SEQ, D_MODEL)
        x = x + ctx @ params['wo'][li].astype(f32) + params['bo'][li]
        h2 = ln(x, params['ln2_w'][li], params['ln2_b'][li])
        m = h2 @ params['w_fc'][li].astype(f32) + params['b_fc'][li]
        m = m * jax.nn.sigmoid(1.702 * m)
        x = x + m @ params['w_pr'][li].astype(f32) + params['b_pr'][li]

    eot = jnp.argmax(tokens, axis=-1)
    xe = x[jnp.arange(B), eot]
    hf = ln(xe, params['ln_final_w'], params['ln_final_b'])
    z = hf @ params['text_proj'].astype(f32)
    return z / jnp.linalg.norm(z, axis=-1, keepdims=True)


if __name__ == "__main__":
    key = jax.random.PRNGKey(0)
    k_tok, k_par = jax.random.split(key)

    # TODO(synk): clip.tokenize (string -> BPE ids) has no Pallas/JAX equivalent;
    # synthesize deterministic token ids with the EOT token (= max id) in-sequence.
    tokens = jax.random.randint(k_tok, (B, SEQ), 1, VOCAB - 1, dtype=jnp.int32)
    tokens = tokens.at[0, 5].set(VOCAB - 1)         # EOT for sample 0
    tokens = tokens.at[1, SEQ - 1].set(VOCAB - 1)   # EOT for sample 1

    params = init_params(k_par)

    z = frozen_clip_text_embedder_forward(tokens, params)
    z = jax.block_until_ready(z)
    z_ref = reference_forward(tokens, params)

    assert z.shape == (B, EMBED_DIM)
    assert bool(jnp.all(jnp.isfinite(z)))
    assert bool(jnp.all(jnp.abs(jnp.sum(z * z, axis=-1) - 1.0) < 1e-3))
    # bf16 matmuls / activation casts vs. the f32 reference: loose tolerance
    assert bool(jnp.max(jnp.abs(z - z_ref)) < 5e-2)
    print("KERNEL_OK")
</pallas_src>

<mosaic_0001>
module attributes {stable_mosaic.version = 11 : i64} {
  func.func @clip_text_tower_kernel(%arg0: i32, %arg1: memref<2xi32, #tpu.memory_space<smem>>, %arg2: memref<2x8x32xf32, #tpu.memory_space<vmem>>, %arg3: memref<1x1x32xf32, #tpu.memory_space<vmem>>, %arg4: memref<1x1x32xf32, #tpu.memory_space<vmem>>, %arg5: memref<1x32x96xbf16, #tpu.memory_space<vmem>>, %arg6: memref<1x1x96xf32, #tpu.memory_space<vmem>>, %arg7: memref<1x32x32xbf16, #tpu.memory_space<vmem>>, %arg8: memref<1x1x32xf32, #tpu.memory_space<vmem>>, %arg9: memref<1x1x32xf32, #tpu.memory_space<vmem>>, %arg10: memref<1x1x32xf32, #tpu.memory_space<vmem>>, %arg11: memref<1x32x128xbf16, #tpu.memory_space<vmem>>, %arg12: memref<1x1x128xf32, #tpu.memory_space<vmem>>, %arg13: memref<1x128x32xbf16, #tpu.memory_space<vmem>>, %arg14: memref<1x1x32xf32, #tpu.memory_space<vmem>>, %arg15: memref<1x32xf32, #tpu.memory_space<vmem>>, %arg16: memref<1x32xf32, #tpu.memory_space<vmem>>, %arg17: memref<32x32xbf16, #tpu.memory_space<vmem>>, %arg18: memref<2x32xf32, #tpu.memory_space<vmem>>, %arg19: memref<2x8x32xf32, #tpu.memory_space<vmem>>, %arg20: memref<8x8xf32, #tpu.memory_space<vmem>>) attributes {dimension_semantics = [#tpu.dimension_semantics<arbitrary>], iteration_bounds = array<i64: 2>, scalar_prefetch = 1 : i64, scratch_operands = 2 : i64, tpu.core_type = #tpu.core_type<tc>, window_params = [{pipeline_mode = #tpu.pipeline_mode<synchronous>, transform_indices = @transform_0, window_bounds = array<i64: 2, 8, 32>}, {transform_indices = @transform_1, window_bounds = array<i64: 1, 1, 32>}, {transform_indices = @transform_2, window_bounds = array<i64: 1, 1, 32>}, {transform_indices = @transform_3, window_bounds = array<i64: 1, 32, 96>}, {transform_indices = @transform_4, window_bounds = array<i64: 1, 1, 96>}, {transform_indices = @transform_5, window_bounds = array<i64: 1, 32, 32>}, {transform_indices = @transform_6, window_bounds = array<i64: 1, 1, 32>}, {transform_indices = @transform_7, window_bounds = array<i64: 1, 1, 32>}, {transform_indices = @transform_8, window_bounds = array<i64: 1, 1, 32>}, {transform_indices = @transform_9, window_bounds = array<i64: 1, 32, 128>}, {transform_indices = @transform_10, window_bounds = array<i64: 1, 1, 128>}, {transform_indices = @transform_11, window_bounds = array<i64: 1, 128, 32>}, {transform_indices = @transform_12, window_bounds = array<i64: 1, 1, 32>}, {pipeline_mode = #tpu.pipeline_mode<synchronous>, transform_indices = @transform_13, window_bounds = array<i64: 1, 32>}, {pipeline_mode = #tpu.pipeline_mode<synchronous>, transform_indices = @transform_14, window_bounds = array<i64: 1, 32>}, {pipeline_mode = #tpu.pipeline_mode<synchronous>, transform_indices = @transform_15, window_bounds = array<i64: 32, 32>}, {pipeline_mode = #tpu.pipeline_mode<synchronous>, transform_indices = @transform_16, window_bounds = array<i64: 2, 32>}]} {
    %c0_i32 = arith.constant 0 : i32
    %0 = arith.cmpi eq, %arg0, %c0_i32 : i32
    %1 = arith.extui %0 : i1 to i32
    %c0_i32_0 = arith.constant 0 : i32
    %2 = arith.cmpi ne, %1, %c0_i32_0 : i32
    scf.if %2 {
      %c0_64 = arith.constant 0 : index
      %c0_65 = arith.constant 0 : index
      %c0_66 = arith.constant 0 : index
      %174 = vector.load %arg2[%c0_64, %c0_65, %c0_66] : memref<2x8x32xf32, #tpu.memory_space<vmem>>, vector<2x8x32xf32>
      %c0_67 = arith.constant 0 : index
      %c0_68 = arith.constant 0 : index
      %c0_69 = arith.constant 0 : index
      %175 = vector.load %arg19[%c0_67, %c0_68, %c0_69] : memref<2x8x32xf32, #tpu.memory_space<vmem>>, vector<2x8x32xf32>
      tpu.vector_store %arg19[%c0_67, %c0_68, %c0_69], %174 {strides = array<i32>} : memref<2x8x32xf32, #tpu.memory_space<vmem>>, vector<2x8x32xf32>,
      %176 = tpu.iota {dimensions = array<i32: 0>} : vector<8x8xi32>
      %177 = tpu.iota {dimensions = array<i32: 1>} : vector<8x8xi32>
      %178 = arith.cmpi sle, %177, %176 : vector<8x8xi32>
      %cst_70 = arith.constant 0.000000e+00 : f32
      %cst_71 = arith.constant -1.000000e+30 : f32
      %179 = vector.broadcast %cst_70 : f32 to vector<8x8xf32>
      %180 = vector.broadcast %cst_71 : f32 to vector<8x8xf32>
      %181 = arith.select %178, %179, %180 : vector<8x8xi1>, vector<8x8xf32>
      %c0_72 = arith.constant 0 : index
      %c0_73 = arith.constant 0 : index
      %182 = vector.load %arg20[%c0_72, %c0_73] : memref<8x8xf32, #tpu.memory_space<vmem>>, vector<8x8xf32>
      tpu.vector_store %arg20[%c0_72, %c0_73], %181 {strides = array<i32>} : memref<8x8xf32, #tpu.memory_space<vmem>>, vector<8x8xf32>,
    } else {
    }
    %c0 = arith.constant 0 : index
    %c0_1 = arith.constant 0 : index
    %c0_2 = arith.constant 0 : index
    %3 = vector.load %arg19[%c0, %c0_1, %c0_2] : memref<2x8x32xf32, #tpu.memory_space<vmem>>, vector<2x8x32xf32>
    %c0_3 = arith.constant 0 : index
    %c0_4 = arith.constant 0 : index
    %c0_5 = arith.constant 0 : index
    %4 = vector.load %arg3[%c0_3, %c0_4, %c0_5] : memref<1x1x32xf32, #tpu.memory_space<vmem>>, vector<1x1x32xf32>
    %5 = vector.shape_cast %4 : vector<1x1x32xf32> to vector<1x32xf32>
    %c0_6 = arith.constant 0 : index
    %c0_7 = arith.constant 0 : index
    %c0_8 = arith.constant 0 : index
    %6 = vector.load %arg4[%c0_6, %c0_7, %c0_8] : memref<1x1x32xf32, #tpu.memory_space<vmem>>, vector<1x1x32xf32>
    %7 = vector.shape_cast %6 : vector<1x1x32xf32> to vector<1x32xf32>
    %cst = arith.constant dense<0.000000e+00> : vector<2x8xf32>
    %8 = vector.multi_reduction <add>, %3, %cst [2] : vector<2x8x32xf32> to vector<2x8xf32>
    %9 = vector.shape_cast %8 : vector<2x8xf32> to vector<2x8x1xf32>
    %cst_9 = arith.constant 3.200000e+01 : f32
    %10 = vector.broadcast %cst_9 : f32 to vector<2x8x1xf32>
    %11 = arith.divf %9, %10 : vector<2x8x1xf32>
    %12 = vector.broadcast %11 : vector<2x8x1xf32> to vector<2x8x32xf32>
    %13 = arith.subf %3, %12 : vector<2x8x32xf32>
    %14 = arith.mulf %13, %13 : vector<2x8x32xf32>
    %cst_10 = arith.constant dense<0.000000e+00> : vector<2x8xf32>
    %15 = vector.multi_reduction <add>, %14, %cst_10 [2] : vector<2x8x32xf32> to vector<2x8xf32>
    %16 = vector.shape_cast %15 : vector<2x8xf32> to vector<2x8x1xf32>
    %cst_11 = arith.constant 3.200000e+01 : f32
    %17 = vector.broadcast %cst_11 : f32 to vector<2x8x1xf32>
    %18 = arith.divf %16, %17 : vector<2x8x1xf32>
    %19 = vector.broadcast %11 : vector<2x8x1xf32> to vector<2x8x32xf32>
    %20 = arith.subf %3, %19 : vector<2x8x32xf32>
    %cst_12 = arith.constant 9.99999974E-6 : f32
    %21 = vector.broadcast %cst_12 : f32 to vector<2x8x1xf32>
    %22 = arith.addf %18, %21 : vector<2x8x1xf32>
    %23 = math.rsqrt %22 : vector<2x8x1xf32>
    %24 = vector.broadcast %23 : vector<2x8x1xf32> to vector<2x8x32xf32>
    %25 = arith.mulf %20, %24 : vector<2x8x32xf32>
    %26 = vector.shape_cast %5 : vector<1x32xf32> to vector<1x1x32xf32>
    %27 = vector.broadcast %26 : vector<1x1x32xf32> to vector<2x8x32xf32>
    %28 = arith.mulf %25, %27 : vector<2x8x32xf32>
    %29 = vector.shape_cast %7 : vector<1x32xf32> to vector<1x1x32xf32>
    %30 = vector.broadcast %29 : vector<1x1x32xf32> to vector<2x8x32xf32>
    %31 = arith.addf %28, %30 : vector<2x8x32xf32>
    %32 = vector.shape_cast %31 : vector<2x8x32xf32> to vector<16x32xf32>
    %33 = arith.truncf %32 : vector<16x32xf32> to vector<16x32xbf16>
    %c0_13 = arith.constant 0 : index
    %c0_14 = arith.constant 0 : index
    %c0_15 = arith.constant 0 : index
    %34 = vector.load %arg5[%c0_13, %c0_14, %c0_15] : memref<1x32x96xbf16, #tpu.memory_space<vmem>>, vector<1x32x96xbf16>
    %35 = vector.shape_cast %34 : vector<1x32x96xbf16> to vector<32x96xbf16>
    %cst_16 = arith.constant dense<0.000000e+00> : vector<16x96xf32>
    %36 = tpu.matmul %33, %35, %cst_16 {dimension_numbers = #tpu.dot_dimension_numbers<[1], [0], [0], [1], [0, 0, 1, 1], [], []>} : vector<16x32xbf16>, vector<32x96xbf16>, vector<16x96xf32> -> vector<16x96xf32>
    %c0_17 = arith.constant 0 : index
    %c0_18 = arith.constant 0 : index
    %c0_19 = arith.constant 0 : index
    %37 = vector.load %arg6[%c0_17, %c0_18, %c0_19] : memref<1x1x96xf32, #tpu.memory_space<vmem>>, vector<1x1x96xf32>
    %38 = vector.shape_cast %37 : vector<1x1x96xf32> to vector<1x96xf32>
    %39 = vector.broadcast %38 : vector<1x96xf32> to vector<16x96xf32>
    %40 = arith.addf %36, %39 : vector<16x96xf32>
    %41 = vector.shape_cast %40 : vector<16x96xf32> to vector<2x8x96xf32>
    %42 = vector.extract_strided_slice %41 {offsets = [0, 0, 0], sizes = [2, 8, 32], strides = [1, 1, 1]} : vector<2x8x96xf32> to vector<2x8x32xf32>
    %43 = vector.extract_strided_slice %41 {offsets = [0, 0, 32], sizes = [2, 8, 32], strides = [1, 1, 1]} : vector<2x8x96xf32> to vector<2x8x32xf32>
    %44 = vector.extract_strided_slice %41 {offsets = [0, 0, 64], sizes = [2, 8, 32], strides = [1, 1, 1]} : vector<2x8x96xf32> to vector<2x8x32xf32>
    %45 = vector.extract_strided_slice %42 {offsets = [0, 0, 0], sizes = [2, 8, 8], strides = [1, 1, 1]} : vector<2x8x32xf32> to vector<2x8x8xf32>
    %46 = vector.extract_strided_slice %42 {offsets = [0, 0, 8], sizes = [2, 8, 8], strides = [1, 1, 1]} : vector<2x8x32xf32> to vector<2x8x8xf32>
    %47 = vector.extract_strided_slice %42 {offsets = [0, 0, 16], sizes = [2, 8, 8], strides = [1, 1, 1]} : vector<2x8x32xf32> to vector<2x8x8xf32>
    %48 = vector.extract_strided_slice %42 {offsets = [0, 0, 24], sizes = [2, 8, 8], strides = [1, 1, 1]} : vector<2x8x32xf32> to vector<2x8x8xf32>
    %49 = vector.shape_cast %45 : vector<2x8x8xf32> to vector<2x1x8x8xf32>
    %50 = vector.shape_cast %46 : vector<2x8x8xf32> to vector<2x1x8x8xf32>
    %51 = vector.shape_cast %47 : vector<2x8x8xf32> to vector<2x1x8x8xf32>
    %52 = vector.shape_cast %48 : vector<2x8x8xf32> to vector<2x1x8x8xf32>
    %53 = tpu.concatenate %49, %50, %51, %52 in 1 : vector<2x1x8x8xf32>, vector<2x1x8x8xf32>, vector<2x1x8x8xf32>, vector<2x1x8x8xf32> -> vector<2x4x8x8xf32>
    %54 = vector.shape_cast %53 : vector<2x4x8x8xf32> to vector<8x8x8xf32>
    %55 = arith.truncf %54 : vector<8x8x8xf32> to vector<8x8x8xbf16>
    %56 = vector.extract_strided_slice %43 {offsets = [0, 0, 0], sizes = [2, 8, 8], strides = [1, 1, 1]} : vector<2x8x32xf32> to vector<2x8x8xf32>
    %57 = vector.extract_strided_slice %43 {offsets = [0, 0, 8], sizes = [2, 8, 8], strides = [1, 1, 1]} : vector<2x8x32xf32> to vector<2x8x8xf32>
    %58 = vector.extract_strided_slice %43 {offsets = [0, 0, 16], sizes = [2, 8, 8], strides = [1, 1, 1]} : vector<2x8x32xf32> to vector<2x8x8xf32>
    %59 = vector.extract_strided_slice %43 {offsets = [0, 0, 24], sizes = [2, 8, 8], strides = [1, 1, 1]} : vector<2x8x32xf32> to vector<2x8x8xf32>
    %60 = vector.shape_cast %56 : vector<2x8x8xf32> to vector<2x1x8x8xf32>
    %61 = vector.shape_cast %57 : vector<2x8x8xf32> to vector<2x1x8x8xf32>
    %62 = vector.shape_cast %58 : vector<2x8x8xf32> to vector<2x1x8x8xf32>
    %63 = vector.shape_cast %59 : vector<2x8x8xf32> to vector<2x1x8x8xf32>
    %64 = tpu.concatenate %60, %61, %62, %63 in 1 : vector<2x1x8x8xf32>, vector<2x1x8x8xf32>, vector<2x1x8x8xf32>, vector<2x1x8x8xf32> -> vector<2x4x8x8xf32>
    %65 = vector.shape_cast %64 : vector<2x4x8x8xf32> to vector<8x8x8xf32>
    %66 = arith.truncf %65 : vector<8x8x8xf32> to vector<8x8x8xbf16>
    %67 = vector.extract_strided_slice %44 {offsets = [0, 0, 0], sizes = [2, 8, 8], strides = [1, 1, 1]} : vector<2x8x32xf32> to vector<2x8x8xf32>
    %68 = vector.extract_strided_slice %44 {offsets = [0, 0, 8], sizes = [2, 8, 8], strides = [1, 1, 1]} : vector<2x8x32xf32> to vector<2x8x8xf32>
    %69 = vector.extract_strided_slice %44 {offsets = [0, 0, 16], sizes = [2, 8, 8], strides = [1, 1, 1]} : vector<2x8x32xf32> to vector<2x8x8xf32>
    %70 = vector.extract_strided_slice %44 {offsets = [0, 0, 24], sizes = [2, 8, 8], strides = [1, 1, 1]} : vector<2x8x32xf32> to vector<2x8x8xf32>
    %71 = vector.shape_cast %67 : vector<2x8x8xf32> to vector<2x1x8x8xf32>
    %72 = vector.shape_cast %68 : vector<2x8x8xf32> to vector<2x1x8x8xf32>
    %73 = vector.shape_cast %69 : vector<2x8x8xf32> to vector<2x1x8x8xf32>
    %74 = vector.shape_cast %70 : vector<2x8x8xf32> to vector<2x1x8x8xf32>
    %75 = tpu.concatenate %71, %72, %73, %74 in 1 : vector<2x1x8x8xf32>, vector<2x1x8x8xf32>, vector<2x1x8x8xf32>, vector<2x1x8x8xf32> -> vector<2x4x8x8xf32>
    %76 = vector.shape_cast %75 : vector<2x4x8x8xf32> to vector<8x8x8xf32>
    %77 = arith.truncf %76 : vector<8x8x8xf32> to vector<8x8x8xbf16>
    "tpu.trace_start"() <{level = 10 : i32, message = "nqd,nkd->nqk"}> : () -> ()
    %cst_20 = arith.constant dense<0.000000e+00> : vector<8x8x8xf32>
    %78 = tpu.matmul %55, %66, %cst_20 {dimension_numbers = #tpu.dot_dimension_numbers<[2], [2], [1], [1], [0, 0, 0, 1, 1, 1], [0], [0]>} : vector<8x8x8xbf16>, vector<8x8x8xbf16>, vector<8x8x8xf32> -> vector<8x8x8xf32>
    "tpu.trace_stop"() : () -> ()
    %c0_21 = arith.constant 0 : index
    %c0_22 = arith.constant 0 : index
    %79 = vector.load %arg20[%c0_21, %c0_22] : memref<8x8xf32, #tpu.memory_space<vmem>>, vector<8x8xf32>
    %80 = vector.shape_cast %79 : vector<8x8xf32> to vector<1x8x8xf32>
    %81 = vector.broadcast %80 : vector<1x8x8xf32> to vector<8x8x8xf32>
    %82 = arith.addf %78, %81 : vector<8x8x8xf32>
    %cst_23 = arith.constant dense<0xFF800000> : vector<8x8xf32>
    %83 = vector.multi_reduction <maximumf>, %82, %cst_23 [2] : vector<8x8x8xf32> to vector<8x8xf32>
    %84 = vector.shape_cast %83 : vector<8x8xf32> to vector<8x8x1xf32>
    %85 = vector.broadcast %84 : vector<8x8x1xf32> to vector<8x8x8xf32>
    %86 = arith.subf %82, %85 : vector<8x8x8xf32>
    %87 = math.exp %86 : vector<8x8x8xf32>
    %cst_24 = arith.constant dense<0.000000e+00> : vector<8x8xf32>
    %88 = vector.multi_reduction <add>, %87, %cst_24 [2] : vector<8x8x8xf32> to vector<8x8xf32>
    %89 = vector.shape_cast %88 : vector<8x8xf32> to vector<8x8x1xf32>
    %90 = vector.broadcast %89 : vector<8x8x1xf32> to vector<8x8x8xf32>
    %91 = arith.divf %87, %90 : vector<8x8x8xf32>
    %92 = arith.truncf %91 : vector<8x8x8xf32> to vector<8x8x8xbf16>
    "tpu.trace_start"() <{level = 10 : i32, message = "nqk,nkd->nqd"}> : () -> ()
    %cst_25 = arith.constant dense<0.000000e+00> : vector<8x8x8xf32>
    %93 = tpu.matmul %92, %77, %cst_25 {dimension_numbers = #tpu.dot_dimension_numbers<[2], [1], [1], [2], [0, 0, 0, 1, 1, 2], [0], [0]>} : vector<8x8x8xbf16>, vector<8x8x8xbf16>, vector<8x8x8xf32> -> vector<8x8x8xf32>
    "tpu.trace_stop"() : () -> ()
    %94 = vector.shape_cast %93 : vector<8x8x8xf32> to vector<2x4x8x8xf32>
    %95 = vector.extract_strided_slice %94 {offsets = [0, 0, 0, 0], sizes = [2, 1, 8, 8], strides = [1, 1, 1, 1]} : vector<2x4x8x8xf32> to vector<2x1x8x8xf32>
    %96 = vector.shape_cast %95 : vector<2x1x8x8xf32> to vector<2x8x8xf32>
    %97 = vector.extract_strided_slice %94 {offsets = [0, 1, 0, 0], sizes = [2, 1, 8, 8], strides = [1, 1, 1, 1]} : vector<2x4x8x8xf32> to vector<2x1x8x8xf32>
    %98 = vector.shape_cast %97 : vector<2x1x8x8xf32> to vector<2x8x8xf32>
    %99 = vector.extract_strided_slice %94 {offsets = [0, 2, 0, 0], sizes = [2, 1, 8, 8], strides = [1, 1, 1, 1]} : vector<2x4x8x8xf32> to vector<2x1x8x8xf32>
    %100 = vector.shape_cast %99 : vector<2x1x8x8xf32> to vector<2x8x8xf32>
    %101 = vector.extract_strided_slice %94 {offsets = [0, 3, 0, 0], sizes = [2, 1, 8, 8], strides = [1, 1, 1, 1]} : vector<2x4x8x8xf32> to vector<2x1x8x8xf32>
    %102 = vector.shape_cast %101 : vector<2x1x8x8xf32> to vector<2x8x8xf32>
    %103 = tpu.concatenate %96, %98, %100, %102 in 2 : vector<2x8x8xf32>, vector<2x8x8xf32>, vector<2x8x8xf32>, vector<2x8x8xf32> -> vector<2x8x32xf32>
    %104 = vector.shape_cast %103 : vector<2x8x32xf32> to vector<16x32xf32>
    %105 = arith.truncf %104 : vector<16x32xf32> to vector<16x32xbf16>
    %c0_26 = arith.constant 0 : index
    %c0_27 = arith.constant 0 : index
    %c0_28 = arith.constant 0 : index
    %106 = vector.load %arg7[%c0_26, %c0_27, %c0_28] : memref<1x32x32xbf16, #tpu.memory_space<vmem>>, vector<1x32x32xbf16>
    %107 = vector.shape_cast %106 : vector<1x32x32xbf16> to vector<32x32xbf16>
    %cst_29 = arith.constant dense<0.000000e+00> : vector<16x32xf32>
    %108 = tpu.matmul %105, %107, %cst_29 {dimension_numbers = #tpu.dot_dimension_numbers<[1], [0], [0], [1], [0, 0, 1, 1], [], []>} : vector<16x32xbf16>, vector<32x32xbf16>, vector<16x32xf32> -> vector<16x32xf32>
    %c0_30 = arith.constant 0 : index
    %c0_31 = arith.constant 0 : index
    %c0_32 = arith.constant 0 : index
    %109 = vector.load %arg8[%c0_30, %c0_31, %c0_32] : memref<1x1x32xf32, #tpu.memory_space<vmem>>, vector<1x1x32xf32>
    %110 = vector.shape_cast %109 : vector<1x1x32xf32> to vector<1x32xf32>
    %111 = vector.broadcast %110 : vector<1x32xf32> to vector<16x32xf32>
    %112 = arith.addf %108, %111 : vector<16x32xf32>
    %113 = vector.shape_cast %112 : vector<16x32xf32> to vector<2x8x32xf32>
    %114 = arith.addf %3, %113 : vector<2x8x32xf32>
    %c0_33 = arith.constant 0 : index
    %c0_34 = arith.constant 0 : index
    %c0_35 = arith.constant 0 : index
    %115 = vector.load %arg9[%c0_33, %c0_34, %c0_35] : memref<1x1x32xf32, #tpu.memory_space<vmem>>, vector<1x1x32xf32>
    %116 = vector.shape_cast %115 : vector<1x1x32xf32> to vector<1x32xf32>
    %c0_36 = arith.constant 0 : index
    %c0_37 = arith.constant 0 : index
    %c0_38 = arith.constant 0 : index
    %117 = vector.load %arg10[%c0_36, %c0_37, %c0_38] : memref<1x1x32xf32, #tpu.memory_space<vmem>>, vector<1x1x32xf32>
    %118 = vector.shape_cast %117 : vector<1x1x32xf32> to vector<1x32xf32>
    %cst_39 = arith.constant dense<0.000000e+00> : vector<2x8xf32>
    %119 = vector.multi_reduction <add>, %114, %cst_39 [2] : vector<2x8x32xf32> to vector<2x8xf32>
    %120 = vector.shape_cast %119 : vector<2x8xf32> to vector<2x8x1xf32>
    %cst_40 = arith.constant 3.200000e+01 : f32
    %121 = vector.broadcast %cst_40 : f32 to vector<2x8x1xf32>
    %122 = arith.divf %120, %121 : vector<2x8x1xf32>
    %123 = vector.broadcast %122 : vector<2x8x1xf32> to vector<2x8x32xf32>
    %124 = arith.subf %114, %123 : vector<2x8x32xf32>
    %125 = arith.mulf %124, %124 : vector<2x8x32xf32>
    %cst_41 = arith.constant dense<0.000000e+00> : vector<2x8xf32>
    %126 = vector.multi_reduction <add>, %125, %cst_41 [2] : vector<2x8x32xf32> to vector<2x8xf32>
    %127 = vector.shape_cast %126 : vector<2x8xf32> to vector<2x8x1xf32>
    %cst_42 = arith.constant 3.200000e+01 : f32
    %128 = vector.broadcast %cst_42 : f32 to vector<2x8x1xf32>
    %129 = arith.divf %127, %128 : vector<2x8x1xf32>
    %130 = vector.broadcast %122 : vector<2x8x1xf32> to vector<2x8x32xf32>
    %131 = arith.subf %114, %130 : vector<2x8x32xf32>
    %cst_43 = arith.constant 9.99999974E-6 : f32
    %132 = vector.broadcast %cst_43 : f32 to vector<2x8x1xf32>
    %133 = arith.addf %129, %132 : vector<2x8x1xf32>
    %134 = math.rsqrt %133 : vector<2x8x1xf32>
    %135 = vector.broadcast %134 : vector<2x8x1xf32> to vector<2x8x32xf32>
    %136 = arith.mulf %131, %135 : vector<2x8x32xf32>
    %137 = vector.shape_cast %116 : vector<1x32xf32> to vector<1x1x32xf32>
    %138 = vector.broadcast %137 : vector<1x1x32xf32> to vector<2x8x32xf32>
    %139 = arith.mulf %136, %138 : vector<2x8x32xf32>
    %140 = vector.shape_cast %118 : vector<1x32xf32> to vector<1x1x32xf32>
    %141 = vector.broadcast %140 : vector<1x1x32xf32> to vector<2x8x32xf32>
    %142 = arith.addf %139, %141 : vector<2x8x32xf32>
    %143 = vector.shape_cast %142 : vector<2x8x32xf32> to vector<16x32xf32>
    %144 = arith.truncf %143 : vector<16x32xf32> to vector<16x32xbf16>
    %c0_44 = arith.constant 0 : index
    %c0_45 = arith.constant 0 : index
    %c0_46 = arith.constant 0 : index
    %145 = vector.load %arg11[%c0_44, %c0_45, %c0_46] : memref<1x32x128xbf16, #tpu.memory_space<vmem>>, vector<1x32x128xbf16>
    %146 = vector.shape_cast %145 : vector<1x32x128xbf16> to vector<32x128xbf16>
    %cst_47 = arith.constant dense<0.000000e+00> : vector<16x128xf32>
    %147 = tpu.matmul %144, %146, %cst_47 {dimension_numbers = #tpu.dot_dimension_numbers<[1], [0], [0], [1], [0, 0, 1, 1], [], []>} : vector<16x32xbf16>, vector<32x128xbf16>, vector<16x128xf32> -> vector<16x128xf32>
    %c0_48 = arith.constant 0 : index
    %c0_49 = arith.constant 0 : index
    %c0_50 = arith.constant 0 : index
    %148 = vector.load %arg12[%c0_48, %c0_49, %c0_50] : memref<1x1x128xf32, #tpu.memory_space<vmem>>, vector<1x1x128xf32>
    %149 = vector.shape_cast %148 : vector<1x1x128xf32> to vector<1x128xf32>
    %150 = vector.broadcast %149 : vector<1x128xf32> to vector<16x128xf32>
    %151 = arith.addf %147, %150 : vector<16x128xf32>
    %cst_51 = arith.constant 1.702000e+00 : f32
    %152 = vector.broadcast %cst_51 : f32 to vector<16x128xf32>
    %153 = arith.mulf %152, %151 : vector<16x128xf32>
    %154 = arith.negf %153 : vector<16x128xf32>
    %155 = math.exp %154 : vector<16x128xf32>
    %cst_52 = arith.constant 1.000000e+00 : f32
    %156 = vector.broadcast %cst_52 : f32 to vector<16x128xf32>
    %157 = arith.addf %156, %155 : vector<16x128xf32>
    %158 = arith.divf %156, %157 : vector<16x128xf32>
    %159 = arith.mulf %151, %158 : vector<16x128xf32>
    %160 = arith.truncf %159 : vector<16x128xf32> to vector<16x128xbf16>
    %c0_53 = arith.constant 0 : index
    %c0_54 = arith.constant 0 : index
    %c0_55 = arith.constant 0 : index
    %161 = vector.load %arg13[%c0_53, %c0_54, %c0_55] : memref<1x128x32xbf16, #tpu.memory_space<vmem>>, vector<1x128x32xbf16>
    %162 = vector.shape_cast %161 : vector<1x128x32xbf16> to vector<128x32xbf16>
    %cst_56 = arith.constant dense<0.000000e+00> : vector<16x32xf32>
    %163 = tpu.matmul %160, %162, %cst_56 {dimension_numbers = #tpu.dot_dimension_numbers<[1], [0], [0], [1], [0, 0, 1, 1], [], []>} : vector<16x128xbf16>, vector<128x32xbf16>, vector<16x32xf32> -> vector<16x32xf32>
    %c0_57 = arith.constant 0 : index
    %c0_58 = arith.constant 0 : index
    %c0_59 = arith.constant 0 : index
    %164 = vector.load %arg14[%c0_57, %c0_58, %c0_59] : memref<1x1x32xf32, #tpu.memory_space<vmem>>, vector<1x1x32xf32>
    %165 = vector.shape_cast %164 : vector<1x1x32xf32> to vector<1x32xf32>
    %166 = vector.broadcast %165 : vector<1x32xf32> to vector<16x32xf32>
    %167 = arith.addf %163, %166 : vector<16x32xf32>
    %168 = vector.shape_cast %167 : vector<16x32xf32> to vector<2x8x32xf32>
    %169 = arith.addf %114, %168 : vector<2x8x32xf32>
    %c0_60 = arith.constant 0 : index
    %c0_61 = arith.constant 0 : index
    %c0_62 = arith.constant 0 : index
    %170 = vector.load %arg19[%c0_60, %c0_61, %c0_62] : memref<2x8x32xf32, #tpu.memory_space<vmem>>, vector<2x8x32xf32>
    tpu.vector_store %arg19[%c0_60, %c0_61, %c0_62], %169 {strides = array<i32>} : memref<2x8x32xf32, #tpu.memory_space<vmem>>, vector<2x8x32xf32>,
    %c1_i32 = arith.constant 1 : i32
    %171 = arith.cmpi eq, %arg0, %c1_i32 : i32
    %172 = arith.extui %171 : i1 to i32
    %c0_i32_63 = arith.constant 0 : i32
    %173 = arith.cmpi ne, %172, %c0_i32_63 : i32
    scf.if %173 {
      %c0_64 = arith.constant 0 : index
      %174 = memref.load %arg1[%c0_64] : memref<2xi32, #tpu.memory_space<smem>>
      %c0_65 = arith.constant 0 : index
      %175 = arith.index_cast %174 : i32 to index
      %c0_66 = arith.constant 0 : index
      %176 = vector.load %arg19[%c0_65, %175, %c0_66] : memref<2x8x32xf32, #tpu.memory_space<vmem>>, vector<1x1x32xf32>
      %177 = vector.shape_cast %176 : vector<1x1x32xf32> to vector<1x32xf32>
      %c1 = arith.constant 1 : index
      %178 = memref.load %arg1[%c1] : memref<2xi32, #tpu.memory_space<smem>>
      %c1_67 = arith.constant 1 : index
      %179 = arith.index_cast %178 : i32 to index
      %c0_68 = arith.constant 0 : index
      %180 = vector.load %arg19[%c1_67, %179, %c0_68] : memref<2x8x32xf32, #tpu.memory_space<vmem>>, vector<1x1x32xf32>
      %181 = vector.shape_cast %180 : vector<1x1x32xf32> to vector<1x32xf32>
      %182 = tpu.concatenate %177, %181 in 0 : vector<1x32xf32>, vector<1x32xf32> -> vector<2x32xf32>
      %c0_69 = arith.constant 0 : index
      %c0_70 = arith.constant 0 : index
      %183 = vector.load %arg15[%c0_69, %c0_70] : memref<1x32xf32, #tpu.memory_space<vmem>>, vector<1x32xf32>
      %c0_71 = arith.constant 0 : index
      %c0_72 = arith.constant 0 : index
      %184 = vector.load %arg16[%c0_71, %c0_72] : memref<1x32xf32, #tpu.memory_space<vmem>>, vector<1x32xf32>
      %cst_73 = arith.constant dense<0.000000e+00> : vector<2xf32>
      %185 = vector.multi_reduction <add>, %182, %cst_73 [1] : vector<2x32xf32> to vector<2xf32>
      %186 = vector.shape_cast %185 : vector<2xf32> to vector<2x1xf32>
      %cst_74 = arith.constant 3.200000e+01 : f32
      %187 = vector.broadcast %cst_74 : f32 to vector<2x1xf32>
      %188 = arith.divf %186, %187 : vector<2x1xf32>
      %189 = vector.broadcast %188 : vector<2x1xf32> to vector<2x32xf32>
      %190 = arith.subf %182, %189 : vector<2x32xf32>
      %191 = arith.mulf %190, %190 : vector<2x32xf32>
      %cst_75 = arith.constant dense<0.000000e+00> : vector<2xf32>
      %192 = vector.multi_reduction <add>, %191, %cst_75 [1] : vector<2x32xf32> to vector<2xf32>
      %193 = vector.shape_cast %192 : vector<2xf32> to vector<2x1xf32>
      %cst_76 = arith.constant 3.200000e+01 : f32
      %194 = vector.broadcast %cst_76 : f32 to vector<2x1xf32>
      %195 = arith.divf %193, %194 : vector<2x1xf32>
      %196 = vector.broadcast %188 : vector<2x1xf32> to vector<2x32xf32>
      %197 = arith.subf %182, %196 : vector<2x32xf32>
      %cst_77 = arith.constant 9.99999974E-6 : f32
      %198 = vector.broadcast %cst_77 : f32 to vector<2x1xf32>
      %199 = arith.addf %195, %198 : vector<2x1xf32>
      %200 = math.rsqrt %199 : vector<2x1xf32>
      %201 = vector.broadcast %200 : vector<2x1xf32> to vector<2x32xf32>
      %202 = arith.mulf %197, %201 : vector<2x32xf32>
      %203 = vector.broadcast %183 : vector<1x32xf32> to vector<2x32xf32>
      %204 = arith.mulf %202, %203 : vector<2x32xf32>
      %205 = vector.broadcast %184 : vector<1x32xf32> to vector<2x32xf32>
      %206 = arith.addf %204, %205 : vector<2x32xf32>
      %207 = arith.truncf %206 : vector<2x32xf32> to vector<2x32xbf16>
      %c0_78 = arith.constant 0 : index
      %c0_79 = arith.constant 0 : index
      %208 = vector.load %arg17[%c0_78, %c0_79] : memref<32x32xbf16, #tpu.memory_space<vmem>>, vector<32x32xbf16>
      %cst_80 = arith.constant dense<0.000000e+00> : vector<2x32xf32>
      %209 = tpu.matmul %207, %208, %cst_80 {dimension_numbers = #tpu.dot_dimension_numbers<[1], [0], [0], [1], [0, 0, 1, 1], [], []>} : vector<2x32xbf16>, vector<32x32xbf16>, vector<2x32xf32> -> vector<2x32xf32>
      %210 = arith.mulf %209, %209 : vector<2x32xf32>
      %cst_81 = arith.constant dense<0.000000e+00> : vector<2xf32>
      %211 = vector.multi_reduction <add>, %210, %cst_81 [1] : vector<2x32xf32> to vector<2xf32>
      %212 = vector.shape_cast %211 : vector<2xf32> to vector<2x1xf32>
      %213 = math.rsqrt %212 : vector<2x1xf32>
      %214 = vector.broadcast %213 : vector<2x1xf32> to vector<2x32xf32>
      %215 = arith.mulf %209, %214 : vector<2x32xf32>
      %c0_82 = arith.constant 0 : index
      %c0_83 = arith.constant 0 : index
      %216 = vector.load %arg18[%c0_82, %c0_83] : memref<2x32xf32, #tpu.memory_space<vmem>>, vector<2x32xf32>
      tpu.vector_store %arg18[%c0_82, %c0_83], %215 {strides = array<i32>} : memref<2x32xf32, #tpu.memory_space<vmem>>, vector<2x32xf32>,
    } else {
    }
    return
  }
  func.func @transform_0(%arg0: i32, %arg1: memref<2xi32, #tpu.memory_space<smem>>) -> (i32, i32, i32) {
    %c0_i32 = arith.constant 0 : i32
    %c0_i32_0 = arith.constant 0 : i32
    %c0_i32_1 = arith.constant 0 : i32
    %c0_i32_2 = arith.constant 0 : i32
    return %c0_i32, %c0_i32_0, %c0_i32_1 : i32, i32, i32
  }
  func.func @transform_1(%arg0: i32, %arg1: memref<2xi32, #tpu.memory_space<smem>>) -> (i32, i32, i32) {
    %c0_i32 = arith.constant 0 : i32
    %c0_i32_0 = arith.constant 0 : i32
    %c0_i32_1 = arith.constant 0 : i32
    return %arg0, %c0_i32, %c0_i32_0 : i32, i32, i32
  }
  func.func @transform_2(%arg0: i32, %arg1: memref<2xi32, #tpu.memory_space<smem>>) -> (i32, i32, i32) {
    %c0_i32 = arith.constant 0 : i32
    %c0_i32_0 = arith.constant 0 : i32
    %c0_i32_1 = arith.constant 0 : i32
    return %arg0, %c0_i32, %c0_i32_0 : i32, i32, i32
  }
  func.func @transform_3(%arg0: i32, %arg1: memref<2xi32, #tpu.memory_space<smem>>) -> (i32, i32, i32) {
    %c0_i32 = arith.constant 0 : i32
    %c0_i32_0 = arith.constant 0 : i32
    %c0_i32_1 = arith.constant 0 : i32
    return %arg0, %c0_i32, %c0_i32_0 : i32, i32, i32
  }
  func.func @transform_4(%arg0: i32, %arg1: memref<2xi32, #tpu.memory_space<smem>>) -> (i32, i32, i32) {
    %c0_i32 = arith.constant 0 : i32
    %c0_i32_0 = arith.constant 0 : i32
    %c0_i32_1 = arith.constant 0 : i32
    return %arg0, %c0_i32, %c0_i32_0 : i32, i32, i32
  }
  func.func @transform_5(%arg0: i32, %arg1: memref<2xi32, #tpu.memory_space<smem>>) -> (i32, i32, i32) {
    %c0_i32 = arith.constant 0 : i32
    %c0_i32_0 = arith.constant 0 : i32
    %c0_i32_1 = arith.constant 0 : i32
    return %arg0, %c0_i32, %c0_i32_0 : i32, i32, i32
  }
  func.func @transform_6(%arg0: i32, %arg1: memref<2xi32, #tpu.memory_space<smem>>) -> (i32, i32, i32) {
    %c0_i32 = arith.constant 0 : i32
    %c0_i32_0 = arith.constant 0 : i32
    %c0_i32_1 = arith.constant 0 : i32
    return %arg0, %c0_i32, %c0_i32_0 : i32, i32, i32
  }
  func.func @transform_7(%arg0: i32, %arg1: memref<2xi32, #tpu.memory_space<smem>>) -> (i32, i32, i32) {
    %c0_i32 = arith.constant 0 : i32
    %c0_i32_0 = arith.constant 0 : i32
    %c0_i32_1 = arith.constant 0 : i32
    return %arg0, %c0_i32, %c0_i32_0 : i32, i32, i32
  }
  func.func @transform_8(%arg0: i32, %arg1: memref<2xi32, #tpu.memory_space<smem>>) -> (i32, i32, i32) {
    %c0_i32 = arith.constant 0 : i32
    %c0_i32_0 = arith.constant 0 : i32
    %c0_i32_1 = arith.constant 0 : i32
    return %arg0, %c0_i32, %c0_i32_0 : i32, i32, i32
  }
  func.func @transform_9(%arg0: i32, %arg1: memref<2xi32, #tpu.memory_space<smem>>) -> (i32, i32, i32) {
    %c0_i32 = arith.constant 0 : i32
    %c0_i32_0 = arith.constant 0 : i32
    %c0_i32_1 = arith.constant 0 : i32
    return %arg0, %c0_i32, %c0_i32_0 : i32, i32, i32
  }
  func.func @transform_10(%arg0: i32, %arg1: memref<2xi32, #tpu.memory_space<smem>>) -> (i32, i32, i32) {
    %c0_i32 = arith.constant 0 : i32
    %c0_i32_0 = arith.constant 0 : i32
    %c0_i32_1 = arith.constant 0 : i32
    return %arg0, %c0_i32, %c0_i32_0 : i32, i32, i32
  }
  func.func @transform_11(%arg0: i32, %arg1: memref<2xi32, #tpu.memory_space<smem>>) -> (i32, i32, i32) {
    %c0_i32 = arith.constant 0 : i32
    %c0_i32_0 = arith.constant 0 : i32
    %c0_i32_1 = arith.constant 0 : i32
    return %arg0, %c0_i32, %c0_i32_0 : i32, i32, i32
  }
  func.func @transform_12(%arg0: i32, %arg1: memref<2xi32, #tpu.memory_space<smem>>) -> (i32, i32, i32) {
    %c0_i32 = arith.constant 0 : i32
    %c0_i32_0 = arith.constant 0 : i32
    %c0_i32_1 = arith.constant 0 : i32
    return %arg0, %c0_i32, %c0_i32_0 : i32, i32, i32
  }
  func.func @transform_13(%arg0: i32, %arg1: memref<2xi32, #tpu.memory_space<smem>>) -> (i32, i32) {
    %c0_i32 = arith.constant 0 : i32
    %c0_i32_0 = arith.constant 0 : i32
    %c0_i32_1 = arith.constant 0 : i32
    return %c0_i32, %c0_i32_0 : i32, i32
  }
  func.func @transform_14(%arg0: i32, %arg1: memref<2xi32, #tpu.memory_space<smem>>) -> (i32, i32) {
    %c0_i32 = arith.constant 0 : i32
    %c0_i32_0 = arith.constant 0 : i32
    %c0_i32_1 = arith.constant 0 : i32
    return %c0_i32, %c0_i32_0 : i32, i32
  }
  func.func @transform_15(%arg0: i32, %arg1: memref<2xi32, #tpu.memory_space<smem>>) -> (i32, i32) {
    %c0_i32 = arith.constant 0 : i32
    %c0_i32_0 = arith.constant 0 : i32
    %c0_i32_1 = arith.constant 0 : i32
    return %c0_i32, %c0_i32_0 : i32, i32
  }
  func.func @transform_16(%arg0: i32, %arg1: memref<2xi32, #tpu.memory_space<smem>>) -> (i32, i32) {
    %c0_i32 = arith.constant 0 : i32
    %c0_i32_0 = arith.constant 0 : i32
    %c0_i32_1 = arith.constant 0 : i32
    return %c0_i32, %c0_i32_0 : i32, i32
  }
}

</mosaic_0001>

<bundles_post_ra>
// kernel: tpu_custom_call.1
= control target key start
LH: loop header
LB: loop body
LE: loop exit
PB: predicated region body
PF: predicated region fallthrough
CT: control target
= control target key end

     0   :  { %s3326_s0 = inlined_call_operand.vmem [shape: s32[2], index: 0, kind: input, shape index: {}]   ;;  %s3327_s1 = inlined_call_operand.vmem [shape: f32[2,8,32], index: 1, kind: input, shape index: {}]   ;;  %s3328_s2 = inlined_call_operand.vmem [shape: f32[2,1,32], index: 2, kind: input, shape index: {}]   ;;  %s3329_s3 = inlined_call_operand.vmem [shape: f32[2,1,32], index: 3, kind: input, shape index: {}]   ;;  %s3330_s4 = inlined_call_operand.vmem [shape: bf16[2,32,96], index: 4, kind: input, shape index: {}]   ;;  %s3331_s5 = inlined_call_operand.vmem [shape: f32[2,1,96], index: 5, kind: input, shape index: {}]   ;;  %s3332_s6 = inlined_call_operand.vmem [shape: bf16[2,32,32], index: 6, kind: input, shape index: {}]   ;;  %s3333_s7 = inlined_call_operand.vmem [shape: f32[2,1,32], index: 7, kind: input, shape index: {}]   ;;  %s3334_s8 = inlined_call_operand.vmem [shape: f32[2,1,32], index: 8, kind: input, shape index: {}]   ;;  %s3335_s9 = inlined_call_operand.vmem [shape: f32[2,1,32], index: 9, kind: input, shape index: {}]   ;;  %s3336_s10 = inlined_call_operand.vmem [shape: bf16[2,32,128], index: 10, kind: input, shape index: {}]   ;;  %s3337_s11 = inlined_call_operand.vmem [shape: f32[2,1,128], index: 11, kind: input, shape index: {}]   ;;  %s3338_s12 = inlined_call_operand.vmem [shape: bf16[2,128,32], index: 12, kind: input, shape index: {}]   ;;  %s3339_s13 = inlined_call_operand.vmem [shape: f32[2,1,32], index: 13, kind: input, shape index: {}]   ;;  %s3340_s14 = inlined_call_operand.vmem [shape: f32[1,32], index: 14, kind: input, shape index: {}]   ;;  %s3341_s15 = inlined_call_operand.vmem [shape: f32[1,32], index: 15, kind: input, shape index: {}]   ;;  %s3342_s16 = inlined_call_operand.vmem [shape: bf16[32,32], index: 16, kind: input, shape index: {}]   ;;  %s3343_s17 = inlined_call_operand.hbm [shape: f32[2,32], index: 17, kind: output, shape index: {}]  }
   0x1   :  { %3348 = sst [smem:[#allocation11_spill]] %s3326_s0 }
   0x2   :  { %3349 = sst [smem:[#allocation12_spill]] %s3327_s1  ;;  %s3357_s26 = sld [smem:[#allocation11_spill]] }
   0x3   :  { %3350 = sst [smem:[#allocation13_spill]] %s3330_s4 }
   0x4   :  { %3351 = sst [smem:[#allocation14_spill]] %s3332_s6 }
   0x5   :  { %3352 = sst [smem:[#allocation15_spill]] %s3337_s11 }
   0x6   :  { %3353 = sst [smem:[#allocation16_spill]] %s3340_s14 }
   0x7   :  { %3354 = sst [smem:[#allocation17_spill]] %s3341_s15 }
   0x8   :  { %3355 = sst [smem:[#allocation18_spill]] %s3342_s16  ;;  %s22_s11 = sshll.u32 %s3357_s26, 4  ;;  %s23_s11 = int_to_ptr.vmem [resolvable:$true] %s22_s11 }
   0x9   :  { %3356 = sst [smem:[#allocation19_spill]] %s3343_s17  ;;  %s2726_s27 = scalar_lea.vmem %s23_s11, 16 }
   0xa   :  { %p2727_p0 = scmp.ne.s32.totalorder %s23_s11, %s2726_s27  ;;  %p2731_p1 = scmp.lt.s32.totalorder %s23_s11, %s23_s11 }
   0xb   :  { %p2732_p2 = scmp.lt.s32.totalorder %s2726_s27, %s2726_s27 }
   0xd   :  { %p2733_p3 = por %p2732_p2, %p2731_p1 }
   0xf   :  { %p2734_p4 = pnand %p2733_p3, %p2727_p0 }
  0x11   :  { %2737 = shalt.err (!%p2734_p4)  }
  0x12   :  { %s2778_s28 = smov [#allocation5]  }
  0x13   :  { %25 = dma.vmem_to_smem %s23_s11, 16, %s2778_s28, [#allocation4] }
  0x14   :  { %2768 = dma.done.wait [#allocation4], 16 }
  0x15   :  { %2769 = vsyncadd [#allocation4], 4294967280 }
  0x16   :  { %27 = sfence }
  0x17   :  { %28 = vsyncpa [#allocation7], 0  ;;  %s2886_s29 = smov 0  }
  0x18 LB: > { %3358 = sst [smem:[#allocation10_spill]] %s2776_s29  ;;  %s2892_s0 = sadd.s32 4294967295, %s2776_s29   ;;  %s2776_s29 = sphi %s2886_s29, %s34_s29  }
  0x19   : > { %p2344_p5 = scmp.ge.s32.totalorder %s2776_s29, 1  ;;  %p559_p6 = scmp.lt.s32.totalorder %s2776_s29, 3 }
  0x1b   : > { %p560_p7 = pnand %p2344_p5, %p559_p6 }
  0x1c   : > { %p643_p8 = scmp.lt.s32.totalorder (!%p560_p7), %s2892_s0, 1  ;;  %s3359_s4 = sld [smem:[#allocation13_spill]] (!%p560_p7) }
  0x1d   : > { %563 = sbr.rel (%p560_p7) target bundleno = 3491 (0xda3), region = 84  ;;  %s3360_s6 = sld [smem:[#allocation14_spill]] (!%p560_p7) }
  0x1e   : > { %p2353_p9 = scmp.ne.s32.totalorder (!%p560_p7), %s2892_s0, 0 }
  0x24   : > { %s2898_s11 = scalar_select %p643_p8, %s2892_s0, 1 }
  0x25   : > { %s3362_s26 = sld [smem:[#allocation12_spill]] (!%p2353_p9)  ;;  %vm694_vm0 = vcmask (!%p2353_p9), 261120   ;;  %v697_v2 = vlaneseq (!%p2353_p9)  ;;  %vm703_vm1 = vcmask (!%p2353_p9), 64512   ;;  %v2779_v5 = vmov (!%p2353_p9), -1e+30  }
  0x26   : > { %s2409_s22 = sshll.u32 %s2898_s11, 4  ;;  %s667_s15 = scalar_lea.vmem %s3334_s8, %s2898_s11 }
  0x27   : > { %s2916_s28 = scalar_lea.vmem %s3359_s4, %s2409_s22  ;;  %s2921_s29 = scalar_lea.vmem %s3360_s6, %s2409_s22  ;;  %v698_v3 = vshrl.u32 (!%p2353_p9), %v697_v2, 7  ;;  %v700_v4 = vand.u32 (!%p2353_p9), 127, %v697_v2 }
  0x28   : > { %s670_s25 = scalar_lea.vmem %s3335_s9, %s2898_s11  ;;  %s2938_s4 = scalar_lea.vmem %s3336_s10, %s2409_s22 }
  0x29   : > { %s3361_s6 = sld [smem:[#allocation15_spill]]  ;;  %s2412_s16 = sshll.u32 %s2898_s11, 6  ;;  %vm701_vm2 = vcmp.le.s32.totalorder (!%p2353_p9), %v700_v4, %v698_v3 }
  0x2a   : > { %s2948_s1 = scalar_lea.vmem %s3338_s12, %s2412_s16  ;;  %s686_s23 = scalar_lea.vmem %s3339_s13, %s2898_s11  ;;  %v702_v6 = vsel (!%p2353_p9), %vm701_vm2, 0.0, %v2779_v5 }
  0x2b   : > { %691 = sbr.rel (%p2353_p9) target bundleno = 50 (0x32), region = 88  ;;  %v692_v0 = vld [vmem:[%s3362_s26] sm:$0xff] (!%p2353_p9)  ;;  %v693_v1 = vld [vmem:[%s3362_s26 + $0x8] sm:$0xff] (!%p2353_p9)  ;;  %704 = vst.msk [vmem:[#allocation3] sm:$0xff] (!%p2353_p9), %vm703_vm1, %v702_v6 }
  0x2c   : > { %695 = vst.msk [vmem:[#allocation2] sm:$0xff] (!%p2353_p9), %vm694_vm0, %v692_v0  ;;  %696 = vst.msk [vmem:[#allocation2 + $0x8] sm:$0xff] (!%p2353_p9), %vm694_vm0, %v693_v1 }
  0x2f   : > { %s678_s14 = scalar_lea.vmem %s3361_s6, %s2898_s11 }
  0x32 PF: > { %vm709_vm3 = vcmask 261120   ;;  %v2658_v21 = vld [vmem:[%s2916_s28] sm:$0xff]   ;;  %v2780_v22 = vmov 0.0   ;;  %v2659_v23 = vld [vmem:[%s2916_s28 + $0x8] sm:$0xff]   ;;  %vm2781_vm4 = vmmov 0   ;;  %s3363_s30 = scalar_lea.vmem %s3328_s2, %s2898_s11  ;;  %s3364_s19 = scalar_lea.vmem %s3329_s3, %s2898_s11  ;;  %vm853_vm5 = vcmask 64512  }
  0x33   : > { %v2961_v7 = vld [vmem:[#allocation2] sm:$0xff]  ;;  %v2963_v8 = vld [vmem:[#allocation2 + $0x8] sm:$0xff]  ;;  %2466 = vmatprep.subr.bf16.mxu0 %v2780_v22  ;;  %2486 = vmatprep.subr.bf16.mxu1 %v2780_v22  ;;  %s3365_s24 = scalar_lea.vmem %s3331_s5, %s2898_s11  ;;  %s2782_s22 = smov 112   ;;  %vm1344_vm6 = vcmask 1043456   ;;  %vm1750_vm7 = vcmask 130048   ;;  %vm1753_vm8 = vcmask 195584  }
  0x34   : > { %v710_v9 = vsel %vm709_vm3, %v2961_v7, 0.0  ;;  %v713_v10 = vsel %vm709_vm3, %v2963_v8, 0.0  ;;  %2467 = vmatpush3.bf16.msra.mxu0 %v2658_v21  ;;  %2470 = vmatprep.mubr.msk.bf16.mxu0 %vm2781_vm4, %v2780_v22  ;;  %v2354_v32 = vld [vmem:[%s3363_s30] ss:$0 sm:$0xff]  ;;  %s2783_s27 = smov 120   ;;  %s2784_s6 = smov 104  }
  0x35   : > { %711 = vadd.xlane.f32.xlu0 %v710_v9  ;;  %2468 = vmatprep.subr.bf16.mxu0 %v2780_v22  ;;  %v2355_v36 = vld [vmem:[%s3364_s19] ss:$0 sm:$0xff]  ;;  %s2785_s16 = smov 96   ;;  %s2786_s28 = smov 64  }
  0x36   : > { %2488 = vmatprep.mubr.msk.bf16.mxu1 %vm2781_vm4, %v2780_v22  ;;  %v2356_v41 = vld [vmem:[%s3365_s24] ss:$0 sm:$0xff]  ;;  %s2787_s30 = smov 16   ;;  %s2788_s18 = smov 8  }
  0x37   : > { %s2789_s17 = smov 24   ;;  %s3366_s21 = scalar_lea.vmem %s3333_s7, %s2898_s11 }
  0x38   : > { %2469 = vmatpush3.bf16.msra.mxu0 %v2659_v23  ;;  %p2397_p10 = scmp.ne.s32.totalorder %s2892_s0, 1 }
  0x39   : > { %714 = vadd.xlane.f32.xlu0 %v713_v10  ;;  %2474 = vmatprep.subr.bf16.mxu0 %v2780_v22  ;;  %s2398_s11 = sld [smem:[#allocation5 + $0x1]] (!%p2397_p10)  ;;  %vm2085_vm9 = vcmask (!%p2397_p10), 1040384   ;;  %vm2089_vm10 = vcmask (!%p2397_p10), 254976   ;;  %vm2791_vm11 = vmmov (!%p2397_p10), 0   ;;  %s3369_s20 = sld [smem:[#allocation16_spill]] (!%p2397_p10) }
  0xc2   : > { %v712_v11 = vpop.xlane.xlu0 %711 }
  0xc3   : > { %v717_v12 = vmul.f32 0.03125, %v712_v11 }
  0xc5   : > { %v719_v13 = vsub.f32 %v2961_v7, %v717_v12 }
  0xc6   : > { %v715_v14 = vpop.xlane.xlu0 %714 }
  0xc7   : > { %v718_v15 = vmul.f32 0.03125, %v715_v14  ;;  %v721_v16 = vmul.f32 %v719_v13, %v719_v13 }
  0xc9   : > { %v720_v17 = vsub.f32 %v2963_v8, %v718_v15  ;;  %v723_v18 = vsel %vm709_vm3, %v721_v16, 0.0  ;;  %v3073_v16 = vld [vmem:[#allocation3] sm:$0xff] }
  0xca   : > { %724 = vadd.xlane.f32.xlu1 %v723_v18 }
  0xcb   : > { %v722_v19 = vmul.f32 %v720_v17, %v720_v17 }
  0xcd   : > { %v726_v20 = vsel %vm709_vm3, %v722_v19, 0.0 }
  0xce   : > { %727 = vadd.xlane.f32.xlu1 %v726_v20 }
 0x157   : > { %v725_v24 = vpop.xlane.xlu1 %724 }
 0x158   : > { %v729_v25 = vmul.f32 0.03125, %v725_v24 }
 0x15a   : > { %v731_v26 = vadd.f32 1e-05, %v729_v25 }
 0x15b   : > { %v728_v27 = vpop.xlane.xlu1 %727 }
 0x15c   : > { %2672 = vrsqrt.f32 %v731_v26  ;;  %v730_v28 = vmul.f32 0.03125, %v728_v27 }
 0x15e   : > { %v732_v29 = vadd.f32 1e-05, %v730_v28 }
 0x160   : > { %2674 = vrsqrt.f32 %v732_v29 }
 0x166   : > { %v2673_v30 = vpop.eup %2672 }
 0x167   : > { %v735_v31 = vmul.f32 %v2673_v30, %v719_v13 }
 0x169   : > { %v743_v35 = vmul.f32 %v2354_v32, %v735_v31 }
 0x16a   : > { %v2675_v33 = vpop.eup %2674 }
 0x16b   : > { %v736_v34 = vmul.f32 %v2675_v33, %v720_v17  ;;  %v751_v38 = vadd.f32 %v2355_v36, %v743_v35 }
 0x16d   : > { %v744_v37 = vmul.f32 %v2354_v32, %v736_v34 }
 0x16f   : > { %v752_v39 = vadd.f32 %v2355_v36, %v744_v37 }
 0x171   : > { %v753_v40 = vpack.c.bf16 %v752_v39, %v751_v38 }
 0x173   : > { %2471 = vmatmul.mubr.msk.bf16.vlgmr.msra.gmra.mrb[0].mxu0 %vm709_vm3, %v753_v40 }
 0x174   : > { %2476 = vmatprep.mubr.msk.bf16.mxu0 %vm2781_vm4, %v2780_v22 }
 0x246   : > { %v814_v42 = vpop.f32.mrb[0].mxu0 }
 0x247   : > { %v815_v43 = vadd.f32 %v2356_v41, %v814_v42  ;;  %v2472_v44 = vpop.f32.mrb[1].mxu0 }
 0x248   : > { %v817_v45 = vpop.f32.mrb[2].mxu0 }
 0x249   : > { %829 = vrot.lane.b32.xlu1 %v815_v43, %s2782_s22  ;;  %823 = vrot.lane.b32.xlu0 %v815_v43, %s2783_s27  ;;  %v2473_v46 = vpop.f32.mrb[3].mxu0  ;;  %v818_v47 = vadd.f32 %v2356_v41, %v817_v45  ;;  %v3001_v48 = vpack.c.bf16 %v815_v43, %v815_v43 }
 0x24b   : > { %v3012_v56 = vpack.c.bf16 %v818_v47, %v818_v47 }
 0x24d   : > { %835 = vrot.lane.b32.xlu1 %v815_v43, %s2784_s6  ;;  %831 = vrot.lane.b32.xlu0 %v818_v47, %s2782_s22  ;;  %s3370_s22 = sld [smem:[#allocation17_spill]] (!%p2397_p10) }
 0x251   : > { %851 = vrot.lane.b32.xlu0 %v3001_v48, %s2785_s16  ;;  %825 = vrot.lane.b32.xlu1 %v818_v47, %s2783_s27 }
 0x255   : > { %837 = vrot.lane.b32.xlu1 %v818_v47, %s2784_s6  ;;  %s2075_s6 = sld [smem:[#allocation5]] (!%p2397_p10) }
 0x2bb   : > { %v830_v49 = vpop.permute.xlu1 %829  ;;  %v824_v50 = vpop.permute.xlu0 %823 }
 0x2bc   : > { %v3004_v51 = vpack.c.bf16 %v830_v49, %v830_v49  ;;  %v3006_v52 = vpack.c.bf16 %v824_v50, %v824_v50 }
 0x2be   : > { %950 = vrot.lane.b32.xlu0 %v3004_v51, %s2785_s16  ;;  %901 = vrot.lane.b32.xlu1 %v3006_v52, %s2785_s16 }
 0x2bf   : > { %v836_v53 = vpop.permute.xlu1 %835  ;;  %v832_v54 = vpop.permute.xlu0 %831 }
 0x2c0   : > { %v3010_v55 = vpack.c.bf16 %v836_v53, %v836_v53  ;;  %v3016_v59 = vpack.c.bf16 %v832_v54, %v832_v54 }
 0x2c2   : > { %999 = vrot.lane.b32.xlu1 %v3010_v55, %s2785_s16  ;;  %1048 = vrot.lane.b32.xlu0 %v3012_v56, %s2785_s16 }
 0x2c3   : > { %v852_v57 = vpop.permute.xlu0 %851  ;;  %v826_v58 = vpop.permute.xlu1 %825 }
 0x2c4   : > { %v858_v60 = vsel %vm853_vm5, %v852_v57, 0  ;;  %v3019_v61 = vpack.c.bf16 %v826_v58, %v826_v58 }
 0x2c5   : > { %2475 = vmatpush3.bf16.xpose.msra.mxu0 %v858_v60 }
 0x2c6   : > { %1097 = vrot.lane.b32.xlu1 %v3019_v61, %s2785_s16  ;;  %1146 = vrot.lane.b32.xlu0 %v3016_v59, %s2785_s16 }
 0x2c7   : > { %v838_v62 = vpop.permute.xlu1 %837  ;;  %2480 = vmatprep.subr.bf16.mxu0 %v2780_v22 }
 0x2c8   : > { %v3024_v63 = vpack.c.bf16 %v838_v62, %v838_v62 }
 0x2ca   : > { %1195 = vrot.lane.b32.xlu1 %v3024_v63, %s2785_s16  ;;  %s2256_s16 = scalar_lea.vmem (!%p2397_p10), [#allocation2], %s2398_s11 }
 0x2cc   : > { %2477 = vmatmul.mubr.msk.bf16.vlgmr.msra.gmra.mrb[4].mxu0 %vm853_vm5, %v3001_v48 }
 0x2cd   : > { %2482 = vmatprep.mubr.msk.bf16.mxu0 %vm2781_vm4, %v2780_v22 }
 0x330   : > { %v951_v0 = vpop.permute.xlu0 %950  ;;  %v902_v1 = vpop.permute.xlu1 %901 }
 0x331   : > { %v907_v2 = vsel %vm853_vm5, %v902_v1, 0  ;;  %v956_v3 = vsel %vm853_vm5, %v951_v0, 0 }
 0x332   : > { %2481 = vmatpush3.bf16.xpose.msra.mxu0 %v907_v2  ;;  %2487 = vmatpush3.bf16.xpose.msra.mxu1 %v956_v3 }
 0x333   : > { %2492 = vmatprep.subr.bf16.mxu0 %v2780_v22  ;;  %2498 = vmatprep.subr.bf16.mxu1 %v2780_v22 }
 0x334   : > { %v1000_v4 = vpop.permute.xlu1 %999  ;;  %v1049_v5 = vpop.permute.xlu0 %1048 }
 0x335   : > { %v1005_v6 = vsel %vm853_vm5, %v1000_v4, 0  ;;  %v1054_v9 = vsel %vm853_vm5, %v1049_v5, 0 }
 0x338   : > { %v1098_v10 = vpop.permute.xlu1 %1097  ;;  %v1147_v11 = vpop.permute.xlu0 %1146 }
 0x339   : > { %2483 = vmatmul.mubr.msk.bf16.vlgmr.msra.gmra.mrb[8].mxu0 %vm853_vm5, %v3006_v52  ;;  %2489 = vmatmul.mubr.msk.bf16.vlgmr.msra.gmra.mrb[0].mxu1 %vm853_vm5, %v3004_v51  ;;  %v1103_v12 = vsel %vm853_vm5, %v1098_v10, 0  ;;  %v1152_v13 = vsel %vm853_vm5, %v1147_v11, 0 }
 0x33a   : > { %2493 = vmatpush3.bf16.xpose.msra.mxu0 %v1005_v6  ;;  %2499 = vmatpush3.bf16.xpose.msra.mxu1 %v1054_v9 }
 0x33b   : > { %2494 = vmatprep.mubr.msk.bf16.mxu0 %vm2781_vm4, %v2780_v22  ;;  %2500 = vmatprep.mubr.msk.bf16.mxu1 %vm2781_vm4, %v2780_v22 }
 0x33c   : > { %2504 = vmatprep.subr.bf16.mxu0 %v2780_v22  ;;  %2510 = vmatprep.subr.bf16.mxu1 %v2780_v22  ;;  %v1196_v14 = vpop.permute.xlu1 %1195 }
 0x33d   : > { %v1201_v15 = vsel %vm853_vm5, %v1196_v14, 0 }
 0x341   : > { %2495 = vmatmul.mubr.msk.bf16.vlgmr.msra.gmra.mrb[12].mxu0 %vm853_vm5, %v3010_v55  ;;  %2501 = vmatmul.mubr.msk.bf16.vlgmr.msra.gmra.mrb[4].mxu1 %vm853_vm5, %v3012_v56 }
 0x342   : > { %2505 = vmatpush3.bf16.xpose.msra.mxu0 %v1103_v12  ;;  %2511 = vmatpush3.bf16.xpose.msra.mxu1 %v1152_v13 }
 0x343   : > { %2506 = vmatprep.mubr.msk.bf16.mxu0 %vm2781_vm4, %v2780_v22  ;;  %2512 = vmatprep.mubr.msk.bf16.mxu1 %vm2781_vm4, %v2780_v22 }
 0x344   : > { %2516 = vmatprep.subr.bf16.mxu0 %v2780_v22  ;;  %2522 = vmatprep.subr.bf16.mxu1 %v2780_v22 }
 0x349   : > { %2507 = vmatmul.mubr.msk.bf16.vlgmr.msra.gmra.mrb[16].mxu0 %vm853_vm5, %v3019_v61  ;;  %2513 = vmatmul.mubr.msk.bf16.vlgmr.msra.gmra.mrb[8].mxu1 %vm853_vm5, %v3016_v59 }
 0x34a   : > { %2517 = vmatpush3.bf16.xpose.msra.mxu0 %v1201_v15  ;;  %2518 = vmatprep.mubr.msk.bf16.mxu0 %vm2781_vm4, %v2780_v22 }
 0x34b   : > { %2528 = vmatprep.subr.bf16.mxu0 %v2780_v22  ;;  %2524 = vmatprep.mubr.msk.bf16.mxu1 %vm2781_vm4, %v2780_v22 }
 0x351   : > { %2519 = vmatmul.mubr.msk.bf16.vlgmr.msra.gmra.mrb[20].mxu0 %vm853_vm5, %v3024_v63 }
 0x352   : > { %2530 = vmatprep.mubr.msk.bf16.mxu0 %vm2781_vm4, %v2780_v22 }
 0x39f   : > { %v894_v17 = vpop.f32.mrb[4].mxu0 }
 0x3a0   : > { %v895_v18 = vadd.f32 %v894_v17, %v3073_v16  ;;  %v2478_v19 = vpop.f32.mrb[5].mxu0 }
 0x3a1   : > { %v897_v20 = vpop.f32.mrb[6].mxu0 }
 0x3a2   : > { %v2479_v21 = vpop.f32.mrb[7].mxu0  ;;  %v1243_v23 = vsel %vm853_vm5, %v895_v18, -inf }
 0x3a3   : > { %1244 = vmax.xlane.f32.xlu0 %v1243_v23 }
 0x40c   : > { %v943_v24 = vpop.f32.mrb[8].mxu0  ;;  %v992_v25 = vpop.f32.mrb[0].mxu1 }
 0x40d   : > { %v3078_v26 = vadd.f32 %v943_v24, %v3073_v16  ;;  %v993_v27 = vadd.f32 %v992_v25, %v3073_v16  ;;  %v2484_v28 = vpop.f32.mrb[9].mxu0  ;;  %v2490_v29 = vpop.f32.mrb[1].mxu1 }
 0x40e   : > { %v946_v30 = vpop.f32.mrb[10].mxu0  ;;  %v995_v31 = vpop.f32.mrb[2].mxu1 }
 0x40f   : > { %v2485_v32 = vpop.f32.mrb[11].mxu0  ;;  %v2491_v33 = vpop.f32.mrb[3].mxu1  ;;  %v1249_v34 = vsel %vm853_vm5, %v993_v27, -inf  ;;  %v1246_v35 = vsel %vm853_vm5, %v3078_v26, -inf }
 0x410   : > { %1250 = vmax.xlane.f32.xlu0 %v1249_v34  ;;  %1247 = vmax.xlane.f32.xlu1 %v1246_v35 }
 0x414   : > { %v1041_v36 = vpop.f32.mrb[12].mxu0  ;;  %v1090_v37 = vpop.f32.mrb[4].mxu1 }
 0x415   : > { %v3085_v38 = vadd.f32 %v1041_v36, %v3073_v16  ;;  %v2496_v39 = vpop.f32.mrb[13].mxu0  ;;  %v2502_v40 = vpop.f32.mrb[5].mxu1  ;;  %v3088_v43 = vadd.f32 %v1090_v37, %v3073_v16 }
 0x416   : > { %v1044_v41 = vpop.f32.mrb[14].mxu0  ;;  %v1093_v42 = vpop.f32.mrb[6].mxu1 }
 0x417   : > { %v2497_v44 = vpop.f32.mrb[15].mxu0  ;;  %v2503_v45 = vpop.f32.mrb[7].mxu1  ;;  %v1252_v46 = vsel %vm853_vm5, %v3085_v38, -inf  ;;  %v1255_v47 = vsel %vm853_vm5, %v3088_v43, -inf }
 0x418   : > { %1253 = vmax.xlane.f32.xlu0 %v1252_v46 }
 0x41c   : > { %v1188_v49 = vpop.f32.mrb[8].mxu1  ;;  %1256 = vmax.xlane.f32.xlu0 %v1255_v47  ;;  %v1139_v50 = vpop.f32.mrb[16].mxu0 }
 0x41d   : > { %v3095_v53 = vadd.f32 %v1188_v49, %v3073_v16  ;;  %v3098_v54 = vadd.f32 %v1139_v50, %v3073_v16  ;;  %v2508_v57 = vpop.f32.mrb[17].mxu0  ;;  %v2514_v58 = vpop.f32.mrb[9].mxu1 }
 0x41e   : > { %v1142_v60 = vpop.f32.mrb[18].mxu0  ;;  %v1191_v62 = vpop.f32.mrb[10].mxu1 }
 0x41f   : > { %v2509_v0 = vpop.f32.mrb[19].mxu0  ;;  %v2515_v1 = vpop.f32.mrb[11].mxu1  ;;  %v1261_v2 = vsel %vm853_vm5, %v3095_v53, -inf  ;;  %v1258_v3 = vsel %vm853_vm5, %v3098_v54, -inf }
 0x420   : > { %1262 = vmax.xlane.f32.xlu0 %v1261_v2  ;;  %1259 = vmax.xlane.f32.xlu1 %v1258_v3 }
 0x424   : > { %v1237_v4 = vpop.f32.mrb[20].mxu0 }
 0x425   : > { %v2520_v5 = vpop.f32.mrb[21].mxu0  ;;  %v3113_v14 = vadd.f32 %v1237_v4, %v3073_v16 }
 0x426   : > { %v1240_v6 = vpop.f32.mrb[22].mxu0 }
 0x427   : > { %v2521_v9 = vpop.f32.mrb[23].mxu0 }
 0x430   : > { %v1245_v10 = vpop.xlane.xlu0 %1244 }
 0x431   : > { %1388 = vrot.lane.b32.xlu1 %v3006_v52, %s2786_s28  ;;  %v1267_v11 = vsub.f32 %v895_v18, %v1245_v10  ;;  %v1264_v52 = vsel %vm853_vm5, %v3113_v14, -inf }
 0x433   : > { %v1275_v12 = vmul.f32 1.442695, %v1267_v11 }
 0x435   : > { %1436 = vrot.lane.b32.xlu1 %v3004_v51, %s2786_s28  ;;  %2676 = vpow2.f32 %v1275_v12 }
 0x436   : > { %1339 = vrot.lane.b32.xlu0 %v3001_v48, %s2786_s28 }
 0x43f   : > { %v3110_v13 = vpop.eup %2676 }
 0x440   : > { %v1291_v15 = vsel %vm853_vm5, %v3110_v13, 0.0 }
 0x455   : > { %1292 = vadd.xlane.f32.xlu0 %v1291_v15 }
 0x459   : > { %1265 = vmax.xlane.f32.xlu1 %v1264_v52 }
 0x46a   : > { %1484 = vrot.lane.b32.xlu1 %v3010_v55, %s2786_s28 }
 0x49d   : > { %v1251_v48 = vpop.xlane.xlu0 %1250  ;;  %v1248_v51 = vpop.xlane.xlu1 %1247 }
 0x49e   : > { %v1269_v17 = vsub.f32 %v993_v27, %v1251_v48  ;;  %v1268_v18 = vsub.f32 %v3078_v26, %v1248_v51 }
 0x4a0   : > { %v1279_v19 = vmul.f32 1.442695, %v1269_v17  ;;  %v1277_v20 = vmul.f32 1.442695, %v1268_v18 }
 0x4a2   : > { %2678 = vpow2.f32 %v1279_v19 }
 0x4a3   : > { %2680 = vpow2.f32 %v1277_v20 }
 0x4a5   : > { %v1254_v16 = vpop.xlane.xlu0 %1253 }
 0x4a6   : > { %v1270_v33 = vsub.f32 %v3085_v38, %v1254_v16 }
 0x4a8   : > { %v1281_v36 = vmul.f32 1.442695, %v1270_v33 }
 0x4a9   : > { %v1257_v21 = vpop.xlane.xlu0 %1256 }
 0x4aa   : > { %v1271_v32 = vsub.f32 %v3088_v43, %v1257_v21 }
 0x4ac   : > { %v3122_v23 = vpop.eup %2678  ;;  %v1283_v34 = vmul.f32 1.442695, %v1271_v32 }
 0x4ad   : > { %v3124_v24 = vpop.eup %2680  ;;  %v1263_v25 = vpop.xlane.xlu0 %1262  ;;  %v1297_v55 = vsel %vm853_vm5, %v3122_v23, 0.0 }
 0x4ae   : > { %v1260_v28 = vpop.xlane.xlu1 %1259  ;;  %1298 = vadd.xlane.f32.xlu0 %v1297_v55  ;;  %v1294_v27 = vsel %vm853_vm5, %v3124_v24, 0.0  ;;  %v1273_v35 = vsub.f32 %v3095_v53, %v1263_v25  ;;  %2682 = vpow2.f32 %v1283_v34 }
 0x4af   : > { %1295 = vadd.xlane.f32.xlu1 %v1294_v27  ;;  %v1272_v37 = vsub.f32 %v3098_v54, %v1260_v28  ;;  %2684 = vpow2.f32 %v1281_v36 }
 0x4b0   : > { %v1287_v39 = vmul.f32 1.442695, %v1273_v35 }
 0x4b1   : > { %v1340_v26 = vpop.permute.xlu0 %1339  ;;  %v1285_v40 = vmul.f32 1.442695, %v1272_v37 }
 0x4b2   : > { %v1389_v29 = vpop.permute.xlu1 %1388  ;;  %v1346_v30 = vsel %vm1344_vm6, %v1340_v26, 0  ;;  %2686 = vpow2.f32 %v1287_v39 }
 0x4b3   : > { %v1394_v31 = vsel %vm1344_vm6, %v1389_v29, 0  ;;  %2523 = vmatpush3.bf16.msra.mxu1 %v1346_v30  ;;  %2688 = vpow2.f32 %v1285_v40 }
 0x4b4   : > { %2529 = vmatpush3.bf16.msra.mxu0 %v1394_v31  ;;  %2534 = vmatprep.subr.bf16.mxu1 %v2780_v22 }
 0x4b5   : > { %2540 = vmatprep.subr.bf16.mxu0 %v2780_v22 }
 0x4c0   : > { %1580 = vrot.lane.b32.xlu1 %v3019_v61, %s2786_s28  ;;  %v3142_v61 = vpop.eup %2682 }
 0x4c1   : > { %v3144_v41 = vpop.eup %2684  ;;  %v1303_v38 = vsel %vm853_vm5, %v3142_v61, 0.0 }
 0x4c2   : > { %v3148_v43 = vpop.eup %2686  ;;  %v1300_v44 = vsel %vm853_vm5, %v3144_v41, 0.0 }
 0x4c3   : > { %v3152_v45 = vpop.eup %2688  ;;  %v1309_v47 = vsel %vm853_vm5, %v3148_v43, 0.0 }
 0x4c4   : > { %1532 = vrot.lane.b32.xlu0 %v3012_v56, %s2786_s28  ;;  %v1437_v56 = vpop.permute.xlu1 %1436  ;;  %v1306_v50 = vsel %vm853_vm5, %v3152_v45, 0.0 }
 0x4c5   : > { %v1442_v60 = vsel %vm1344_vm6, %v1437_v56, 0 }
 0x4e2   : > { %v1293_v42 = vpop.xlane.xlu0 %1292 }
 0x4e3   : > { %2690 = vrcp.f32 %v1293_v42  ;;  %1304 = vadd.xlane.f32.xlu0 %v1303_v38 }
 0x4e4   : > { %1301 = vadd.xlane.f32.xlu1 %v1300_v44 }
 0x4e6   : > { %v1266_v46 = vpop.xlane.xlu1 %1265 }
 0x4e7   : > { %v1274_v49 = vsub.f32 %v3113_v14, %v1266_v46  ;;  %1310 = vadd.xlane.f32.xlu0 %v1309_v47 }
 0x4e8   : > { %1307 = vadd.xlane.f32.xlu1 %v1306_v50  ;;  %v2660_v50 = vld [vmem:[%s2921_s29] sm:$0xff]  }
 0x4e9   : > { %v1289_v53 = vmul.f32 1.442695, %v1274_v49 }
 0x4ea   : > { %v1485_v1 = vpop.permute.xlu1 %1484 }
 0x4eb   : > { %2692 = vpow2.f32 %v1289_v53 }
 0x4ed   : > { %v2691_v54 = vpop.eup %2690 }
 0x4ee   : > { %v1316_v57 = vmul.f32 %v2691_v54, %v3110_v13 }
 0x4f0   : > { %v1331_v58 = vpack.c.bf16 %v1316_v57, %v1316_v57 }
 0x4f2   : > { %2525 = vmatmul.mubr.msk.bf16.vlgmr.msra.gmra.mrb[12].mxu1 %vm853_vm5, %v1331_v58 }
 0x4f3   : > { %2535 = vmatpush3.bf16.msra.mxu1 %v1442_v60  ;;  %2536 = vmatprep.mubr.msk.bf16.mxu1 %vm2781_vm4, %v2780_v22 }
 0x4f4   : > { %2546 = vmatprep.subr.bf16.mxu1 %v2780_v22 }
 0x4f5   : > { %v3165_v62 = vpop.eup %2692 }
 0x4f6   : > { %v1312_v0 = vsel %vm853_vm5, %v3165_v62, 0.0 }
 0x4f7   : > { %1313 = vadd.xlane.f32.xlu1 %v1312_v0 }
 0x4fd   : > { %1628 = vrot.lane.b32.xlu0 %v3016_v59, %s2786_s28  ;;  %v1490_v59 = vsel %vm1344_vm6, %v1485_v1, 0 }
 0x508   : > { %1676 = vrot.lane.b32.xlu1 %v3024_v63, %s2786_s28 }
 0x53b   : > { %v1299_v2 = vpop.xlane.xlu0 %1298 }
 0x53c   : > { %2694 = vrcp.f32 %v1299_v2  ;;  %v1296_v3 = vpop.xlane.xlu1 %1295 }
 0x53d   : > { %2696 = vrcp.f32 %v1296_v3 }
 0x53f   : > { %v1533_v10 = vpop.permute.xlu0 %1532 }
 0x540   : > { %v1538_v13 = vsel %vm1344_vm6, %v1533_v10, 0  ;;  %v1581_v63 = vpop.permute.xlu1 %1580 }
 0x541   : > { %v1586_v28 = vsel %vm1344_vm6, %v1581_v63, 0 }
 0x546   : > { %v2695_v4 = vpop.eup %2694 }
 0x547   : > { %v2697_v5 = vpop.eup %2696  ;;  %v1320_v6 = vmul.f32 %v2695_v4, %v3122_v23 }
 0x548   : > { %v1318_v9 = vmul.f32 %v2697_v5, %v3124_v24 }
 0x549   : > { %v1333_v11 = vpack.c.bf16 %v1320_v6, %v1320_v6 }
 0x54a   : > { %v1332_v12 = vpack.c.bf16 %v1318_v9, %v1318_v9 }
 0x54b   : > { %2537 = vmatmul.mubr.msk.bf16.vlgmr.msra.gmra.mrb[16].mxu1 %vm853_vm5, %v1333_v11  ;;  %v2661_v11 = vld [vmem:[%s2921_s29 + $0x8] sm:$0xff]  }
 0x54c   : > { %2531 = vmatmul.mubr.msk.bf16.vlgmr.msra.gmra.mrb[24].mxu0 %vm853_vm5, %v1332_v12  ;;  %2547 = vmatpush3.bf16.msra.mxu1 %v1538_v13 }
 0x54d   : > { %2541 = vmatpush3.bf16.msra.mxu0 %v1490_v59  ;;  %2542 = vmatprep.mubr.msk.bf16.mxu0 %vm2781_vm4, %v2780_v22 }
 0x54e   : > { %2548 = vmatprep.mubr.msk.bf16.mxu1 %vm2781_vm4, %v2780_v22  ;;  %2552 = vmatprep.subr.bf16.mxu0 %v2780_v22 }
 0x54f   : > { %2558 = vmatprep.subr.bf16.mxu1 %v2780_v22 }
 0x570   : > { %v1305_v14 = vpop.xlane.xlu0 %1304 }
 0x571   : > { %2698 = vrcp.f32 %v1305_v14  ;;  %v1302_v15 = vpop.xlane.xlu1 %1301 }
 0x572   : > { %2700 = vrcp.f32 %v1302_v15 }
 0x574   : > { %v1311_v52 = vpop.xlane.xlu0 %1310 }
 0x575   : > { %2702 = vrcp.f32 %v1311_v52  ;;  %v1308_v48 = vpop.xlane.xlu1 %1307 }
 0x576   : > { %2704 = vrcp.f32 %v1308_v48 }
 0x578   : > { %v1629_v20 = vpop.permute.xlu0 %1628 }
 0x579   : > { %v1634_v25 = vsel %vm1344_vm6, %v1629_v20, 0 }
 0x57b   : > { %v2699_v51 = vpop.eup %2698 }
 0x57c   : > { %v2701_v17 = vpop.eup %2700  ;;  %v1324_v18 = vmul.f32 %v2699_v51, %v3142_v61 }
 0x57d   : > { %v1322_v19 = vmul.f32 %v2701_v17, %v3144_v41 }
 0x57e   : > { %v1335_v16 = vpack.c.bf16 %v1324_v18, %v1324_v18 }
 0x57f   : > { %v2703_v21 = vpop.eup %2702  ;;  %v1334_v23 = vpack.c.bf16 %v1322_v19, %v1322_v19 }
 0x580   : > { %v2705_v24 = vpop.eup %2704  ;;  %2549 = vmatmul.mubr.msk.bf16.vlgmr.msra.gmra.mrb[20].mxu1 %vm853_vm5, %v1335_v16  ;;  %v1328_v55 = vmul.f32 %v2703_v21, %v3148_v43 }
 0x581   : > { %2543 = vmatmul.mubr.msk.bf16.vlgmr.msra.gmra.mrb[28].mxu0 %vm853_vm5, %v1334_v23  ;;  %2559 = vmatpush3.bf16.msra.mxu1 %v1634_v25  ;;  %v1326_v27 = vmul.f32 %v2705_v24, %v3152_v45 }
 0x582   : > { %2553 = vmatpush3.bf16.msra.mxu0 %v1586_v28  ;;  %2554 = vmatprep.mubr.msk.bf16.mxu0 %vm2781_vm4, %v2780_v22  ;;  %v1337_v29 = vpack.c.bf16 %v1328_v55, %v1328_v55 }
 0x583   : > { %2560 = vmatprep.mubr.msk.bf16.mxu1 %vm2781_vm4, %v2780_v22  ;;  %2564 = vmatprep.subr.bf16.mxu0 %v2780_v22  ;;  %v1336_v30 = vpack.c.bf16 %v1326_v27, %v1326_v27 }
 0x584   : > { %v1314_v26 = vpop.xlane.xlu1 %1313  ;;  %2570 = vmatprep.subr.bf16.mxu1 %v2780_v22 }
 0x585   : > { %2706 = vrcp.f32 %v1314_v26  ;;  %v2376_v26 = vld [vmem:[%s3366_s21] ss:$0 sm:$0xff] }
 0x588   : > { %2561 = vmatmul.mubr.msk.bf16.vlgmr.msra.gmra.mrb[24].mxu1 %vm853_vm5, %v1337_v29  ;;  %v1677_v31 = vpop.permute.xlu1 %1676 }
 0x589   : > { %2555 = vmatmul.mubr.msk.bf16.vlgmr.msra.gmra.mrb[32].mxu0 %vm853_vm5, %v1336_v30  ;;  %v1682_v32 = vsel %vm1344_vm6, %v1677_v31, 0  ;;  %2574 = vmatprep.mubr.msk.bf16.mxu1 %vm2781_vm4, %v2780_v22 }
 0x58a   : > { %2565 = vmatpush3.bf16.msra.mxu0 %v1682_v32  ;;  %2566 = vmatprep.mubr.msk.bf16.mxu0 %vm2781_vm4, %v2780_v22 }
 0x58b   : > { %2578 = vmatprep.subr.bf16.mxu0 %v2780_v22  ;;  %2571 = vmatpush3.bf16.msra.mxu1 %v2660_v50 }
 0x58c   : > { %2572 = vmatprep.subr.bf16.mxu1 %v2780_v22 }
 0x58f   : > { %v2707_v33 = vpop.eup %2706  ;;  %2573 = vmatpush3.bf16.msra.mxu1 %v2661_v11  ;;  %v2665_v11 = vld [vmem:[%s2948_s1 + $0x8] sm:$0xff]  }
 0x590   : > { %v1330_v34 = vmul.f32 %v2707_v33, %v3165_v62  ;;  %2586 = vmatprep.subr.bf16.mxu1 %v2780_v22 }
 0x592   : > { %v1338_v35 = vpack.c.bf16 %v1330_v34, %v1330_v34 }
 0x594   : > { %2567 = vmatmul.mubr.msk.bf16.vlgmr.msra.gmra.mrb[36].mxu0 %vm853_vm5, %v1338_v35 }
 0x595   : > { %2582 = vmatprep.mubr.msk.bf16.mxu0 %vm2781_vm4, %v2780_v22 }
 0x5c5   : > { %v1382_v36 = vpop.f32.mrb[12].mxu1 }
 0x5c6   : > { %v2526_v37 = vpop.f32.mrb[13].mxu1 }
 0x5c7   : > { %v1385_v39 = vpop.f32.mrb[14].mxu1 }
 0x5c8   : > { %v2527_v40 = vpop.f32.mrb[15].mxu1 }
 0x61e   : > { %v1478_v61 = vpop.f32.mrb[16].mxu1 }
 0x61f   : > { %v1430_v41 = vpop.f32.mrb[24].mxu0  ;;  %v2538_v56 = vpop.f32.mrb[17].mxu1 }
 0x620   : > { %v2532_v42 = vpop.f32.mrb[25].mxu0  ;;  %v1481_v38 = vpop.f32.mrb[18].mxu1 }
 0x621   : > { %v1433_v43 = vpop.f32.mrb[26].mxu0  ;;  %v2539_v44 = vpop.f32.mrb[19].mxu1 }
 0x622   : > { %v2533_v45 = vpop.f32.mrb[27].mxu0 }
 0x623   : > { %v2662_v45 = vld [vmem:[%s2938_s4] sm:$0xff]  }
 0x624   : > { %2579 = vmatpush3.bf16.msra.mxu0 %v2662_v45 }
 0x625   : > { %2580 = vmatprep.subr.bf16.mxu0 %v2780_v22 }
 0x653   : > { %v1574_v46 = vpop.f32.mrb[20].mxu1 }
 0x654   : > { %v1526_v47 = vpop.f32.mrb[28].mxu0  ;;  %v2550_v49 = vpop.f32.mrb[21].mxu1 }
 0x655   : > { %v2544_v53 = vpop.f32.mrb[29].mxu0  ;;  %v1577_v54 = vpop.f32.mrb[22].mxu1 }
 0x656   : > { %v1529_v57 = vpop.f32.mrb[30].mxu0  ;;  %v2551_v58 = vpop.f32.mrb[23].mxu1 }
 0x657   : > { %v2545_v60 = vpop.f32.mrb[31].mxu0 }
 0x65b   : > { %v1670_v62 = vpop.f32.mrb[24].mxu1 }
 0x65c   : > { %v1622_v0 = vpop.f32.mrb[32].mxu0  ;;  %v2648_v1 = vpack.i.bf16 %v1670_v62, %v1478_v61  ;;  %v2562_v2 = vpop.f32.mrb[25].mxu1  ;;  %v2380_v62 = vld [vmem:[%s667_s15] ss:$0 sm:$0xff] }
 0x65d   : > { %v2643_v3 = vpack.i.bf16 %v1622_v0, %v1430_v41  ;;  %v2556_v4 = vpop.f32.mrb[33].mxu0  ;;  %v1673_v5 = vpop.f32.mrb[26].mxu1 }
 0x65e   : > { %v1625_v6 = vpop.f32.mrb[34].mxu0  ;;  %v2563_v9 = vpop.f32.mrb[27].mxu1  ;;  %2649 = vrot.lane.b32.xlu1 %v2648_v1, %s2787_s30 }
 0x65f   : > { %2644 = vrot.lane.b32.xlu0 %v2643_v3, %s2788_s18  ;;  %v2557_v10 = vpop.f32.mrb[35].mxu0  ;;  %v2381_v3 = vld [vmem:[%s670_s25] ss:$0 sm:$0xff]  ;;  %s3368_s18 = sld [smem:[#allocation18_spill]] (!%p2397_p10) }
 0x660   : > { %v2664_v10 = vld [vmem:[%s2948_s1] sm:$0xff]  }
 0x667   : > { %v1718_v12 = vpop.f32.mrb[36].mxu0 }
 0x668   : > { %v2653_v13 = vpack.i.bf16 %v1718_v12, %v1526_v47  ;;  %v2568_v59 = vpop.f32.mrb[37].mxu0  ;;  %v2666_v12 = vld [vmem:[%s2948_s1 + $0x10] sm:$0xff]  }
 0x669   : > { %v1721_v63 = vpop.f32.mrb[38].mxu0  ;;  %v2668_v59 = vld [vmem:[%s2948_s1 + $0x20] sm:$0xff]  }
 0x66a   : > { %2654 = vrot.lane.b32.xlu0 %v2653_v13, %s2789_s17  ;;  %v2569_v14 = vpop.f32.mrb[39].mxu0  ;;  %v2667_v13 = vld [vmem:[%s2948_s1 + $0x18] sm:$0xff]   ;;  %v2669_v63 = vld [vmem:[%s2948_s1 + $0x28] sm:$0xff]  }
 0x66b   : > { %v2670_v14 = vld [vmem:[%s2948_s1 + $0x30] sm:$0xff]  }
 0x6d0   : > { %v2650_v52 = vpop.permute.xlu1 %2649 }
 0x6d1   : > { %v2645_v15 = vpop.permute.xlu0 %2644  ;;  %v2652_v17 = vunpack.i.h.bf16 %v2650_v52  ;;  %v2651_v18 = vunpack.i.l.bf16 %v2650_v52  ;;  %v2382_v52 = vld [vmem:[%s678_s14] ss:$0 sm:$0xff] }
 0x6d2   : > { %v2647_v48 = vunpack.i.h.bf16 %v2645_v15  ;;  %v2646_v51 = vunpack.i.l.bf16 %v2645_v15  ;;  %v2671_v15 = vld [vmem:[%s2948_s1 + $0x38] sm:$0xff]  }
 0x6d4   : > { %v1749_v19 = vsel %vm853_vm5, %v1574_v46, %v2647_v48  ;;  %v1748_v20 = vsel %vm853_vm5, %v1382_v36, %v2646_v51  ;;  %v2663_v46 = vld [vmem:[%s2938_s4 + $0x8] sm:$0xff]  }
 0x6d5   : > { %v1751_v24 = vsel %vm1750_vm7, %v1748_v20, %v2651_v18  ;;  %v1752_v25 = vsel %vm1750_vm7, %v1749_v19, %v2652_v17  ;;  %2581 = vmatpush3.bf16.msra.mxu0 %v2663_v46 }
 0x6dc   : > { %v2655_v16 = vpop.permute.xlu0 %2654 }
 0x6dd   : > { %v2657_v21 = vunpack.i.h.bf16 %v2655_v16  ;;  %v2656_v23 = vunpack.i.l.bf16 %v2655_v16 }
 0x6df   : > { %v1755_v28 = vsel %vm1753_vm8, %v1752_v25, %v2657_v21  ;;  %v1754_v55 = vsel %vm1753_vm8, %v1751_v24, %v2656_v23 }
 0x6e0   : > { %v1756_v27 = vpack.c.bf16 %v1755_v28, %v1754_v55 }
 0x6e2   : > { %2575 = vmatmul.mubr.msk.bf16.vlgmr.msra.gmra.mrb[28].mxu1 %vm709_vm3, %v1756_v27 }
 0x6e3   : > { %2602 = vmatprep.mubr.msk.bf16.mxu1 %vm2781_vm4, %v2780_v22  ;;  %2587 = vmatpush3.bf16.msra.mxu1 %v2664_v10 }
 0x6e4   : > { %2588 = vmatprep.subr.bf16.mxu1 %v2780_v22 }
 0x6e7   : > { %2589 = vmatpush3.bf16.msra.mxu1 %v2665_v11 }
 0x6e8   : > { %2590 = vmatprep.subr.bf16.mxu1 %v2780_v22 }
 0x6eb   : > { %2591 = vmatpush3.bf16.msra.mxu1 %v2666_v12 }
 0x6ec   : > { %2592 = vmatprep.subr.bf16.mxu1 %v2780_v22 }
 0x6ef   : > { %2593 = vmatpush3.bf16.msra.mxu1 %v2667_v13 }
 0x6f0   : > { %2594 = vmatprep.subr.bf16.mxu1 %v2780_v22 }
 0x6f3   : > { %2595 = vmatpush3.bf16.msra.mxu1 %v2668_v59 }
 0x6f4   : > { %2596 = vmatprep.subr.bf16.mxu1 %v2780_v22 }
 0x6f7   : > { %2597 = vmatpush3.bf16.msra.mxu1 %v2669_v63 }
 0x6f8   : > { %2598 = vmatprep.subr.bf16.mxu1 %v2780_v22 }
 0x6fb   : > { %2599 = vmatpush3.bf16.msra.mxu1 %v2670_v14 }
 0x6fc   : > { %2600 = vmatprep.subr.bf16.mxu1 %v2780_v22 }
 0x6ff   : > { %2601 = vmatpush3.bf16.msra.mxu1 %v2671_v15 }
 0x7b5   : > { %v1817_v29 = vpop.f32.mrb[28].mxu1 }
 0x7b6   : > { %v1818_v30 = vadd.f32 %v2376_v26, %v1817_v29  ;;  %v2576_v31 = vpop.f32.mrb[29].mxu1 }
 0x7b7   : > { %v1820_v32 = vpop.f32.mrb[30].mxu1 }
 0x7b8   : > { %v3226_v33 = vadd.f32 %v1818_v30, %v2961_v7  ;;  %v1821_v34 = vadd.f32 %v2376_v26, %v1820_v32  ;;  %v2577_v35 = vpop.f32.mrb[31].mxu1  ;;  %v2388_v32 = vld [vmem:[%s686_s23] ss:$0 sm:$0xff]  ;;  %s2076_s23 = scalar_lea.vmem (!%p2397_p10), [#allocation2], %s2075_s6 }
 0x7ba   : > { %v3229_v36 = vadd.f32 %v1821_v34, %v2963_v8  ;;  %v1828_v37 = vsel %vm709_vm3, %v3226_v33, 0.0 }
 0x7bb   : > { %1829 = vadd.xlane.f32.xlu1 %v1828_v37 }
 0x7bc   : > { %v1831_v39 = vsel %vm709_vm3, %v3229_v36, 0.0 }
 0x7bd   : > { %1832 = vadd.xlane.f32.xlu0 %v1831_v39 }
 0x848   : > { %v1830_v40 = vpop.xlane.xlu1 %1829 }
 0x849   : > { %v1834_v61 = vmul.f32 0.03125, %v1830_v40 }
 0x84a   : > { %v1833_v41 = vpop.xlane.xlu0 %1832 }
 0x84b   : > { %v1836_v7 = vsub.f32 %v3226_v33, %v1834_v61  ;;  %v1835_v56 = vmul.f32 0.03125, %v1833_v41 }
 0x84d   : > { %v1837_v42 = vsub.f32 %v3229_v36, %v1835_v56  ;;  %v1838_v8 = vmul.f32 %v1836_v7, %v1836_v7 }
 0x84f   : > { %v1840_v38 = vsel %vm709_vm3, %v1838_v8, 0.0  ;;  %v1839_v43 = vmul.f32 %v1837_v42, %v1837_v42 }
 0x850   : > { %1841 = vadd.xlane.f32.xlu0 %v1840_v38 }
 0x851   : > { %v1843_v44 = vsel %vm709_vm3, %v1839_v43, 0.0 }
 0x854   : > { %1844 = vadd.xlane.f32.xlu0 %v1843_v44 }
 0x8dd   : > { %v1842_v47 = vpop.xlane.xlu0 %1841 }
 0x8de   : > { %v1846_v49 = vmul.f32 0.03125, %v1842_v47  ;;  %v2720_v47 = vld [vmem:[%s3368_s18] sm:$0xff] (!%p2397_p10)  }
 0x8e0   : > { %v1848_v50 = vadd.f32 1e-05, %v1846_v49  ;;  %v2790_v49 = vmov (!%p2397_p10), 0.0  }
 0x8e1   : > { %v1845_v53 = vpop.xlane.xlu0 %1844  ;;  %2606 = vmatprep.subr.bf16.mxu0 (!%p2397_p10), %v2790_v49 }
 0x8e2   : > { %2708 = vrsqrt.f32 %v1848_v50  ;;  %v1847_v54 = vmul.f32 0.03125, %v1845_v53  ;;  %v2721_v50 = vld [vmem:[%s3368_s18 + $0x8] sm:$0xff] (!%p2397_p10)  }
 0x8e4   : > { %v1849_v57 = vadd.f32 1e-05, %v1847_v54 }
 0x8e6   : > { %2710 = vrsqrt.f32 %v1849_v57 }
 0x8ec   : > { %v2709_v58 = vpop.eup %2708 }
 0x8ed   : > { %v1852_v60 = vmul.f32 %v2709_v58, %v1836_v7 }
 0x8ef   : > { %v1860_v1 = vmul.f32 %v2380_v62, %v1852_v60  ;;  %v2400_v60 = vld [vmem:[%s3369_s20] ss:$0 sm:$0xff] (!%p2397_p10) }
 0x8f0   : > { %v2711_v0 = vpop.eup %2710 }
 0x8f1   : > { %v1853_v2 = vmul.f32 %v2711_v0, %v1837_v42  ;;  %v1868_v5 = vadd.f32 %v2381_v3, %v1860_v1  ;;  %v2401_v0 = vld [vmem:[%s3370_s22] ss:$0 sm:$0xff] (!%p2397_p10) }
 0x8f3   : > { %v1861_v4 = vmul.f32 %v2380_v62, %v1853_v2 }
 0x8f5   : > { %v1869_v6 = vadd.f32 %v2381_v3, %v1861_v4 }
 0x8f7   : > { %v1870_v9 = vpack.c.bf16 %v1869_v6, %v1868_v5 }
 0x8f9   : > { %2583 = vmatmul.mubr.msk.bf16.vlgmr.msra.gmra.mrb[40].mxu0 %vm709_vm3, %v1870_v9 }
 0x8fa   : > { %2610 = vmatprep.mubr.msk.bf16.mxu0 (!%p2397_p10), %vm2791_vm11, %v2790_v49  ;;  %2607 = vmatpush3.bf16.msra.mxu0 (!%p2397_p10), %v2720_v47 }
 0x8fb   : > { %2608 = vmatprep.subr.bf16.mxu0 (!%p2397_p10), %v2790_v49 }
 0x8fe   : > { %2609 = vmatpush3.bf16.msra.mxu0 (!%p2397_p10), %v2721_v50 }
 0x9cc   : > { %v1931_v48 = vpop.f32.mrb[40].mxu0 }
 0x9cd   : > { %v1932_v51 = vadd.f32 %v2382_v52, %v1931_v48  ;;  %v2584_v17 = vpop.f32.mrb[41].mxu0 }
 0x9ce   : > { %v1934_v18 = vpop.f32.mrb[42].mxu0 }
 0x9cf   : > { %v2386_v19 = vmul.f32 -1.702, %v1932_v51  ;;  %v1935_v20 = vadd.f32 %v2382_v52, %v1934_v18  ;;  %v2585_v16 = vpop.f32.mrb[43].mxu0 }
 0x9d1   : > { %v1942_v21 = vmul.f32 1.442695, %v2386_v19  ;;  %v2387_v23 = vmul.f32 -1.702, %v1935_v20 }
 0x9d3   : > { %2712 = vpow2.f32 %v1942_v21  ;;  %v1944_v24 = vmul.f32 1.442695, %v2387_v23 }
 0x9d5   : > { %2714 = vpow2.f32 %v1944_v24 }
 0x9dd   : > { %v2713_v22 = vpop.eup %2712 }
 0x9de   : > { %v1946_v25 = vadd.f32 1.0, %v2713_v22 }
 0x9df   : > { %v2715_v28 = vpop.eup %2714 }
 0x9e0   : > { %2716 = vrcp.f32 %v1946_v25  ;;  %v1947_v55 = vadd.f32 1.0, %v2715_v28 }
 0x9e2   : > { %2718 = vrcp.f32 %v1947_v55 }
 0x9ea   : > { %v2717_v27 = vpop.eup %2716 }
 0x9eb   : > { %v1952_v29 = vmul.f32 %v2717_v27, %v1932_v51 }
 0x9ec   : > { %v2719_v26 = vpop.eup %2718 }
 0x9ed   : > { %v1953_v30 = vmul.f32 %v2719_v26, %v1935_v20 }
 0x9ef   : > { %v1954_v31 = vpack.c.bf16 %v1953_v30, %v1952_v29 }
 0x9f1   : > { %2603 = vmatmul.mubr.bf16.vlgmr.msra.gmra.mrb[32].mxu1 %v1954_v31 }
 0xac4   : > { %v2060_v34 = vpop.f32.mrb[32].mxu1 }
 0xac5   : > { %v2061_v35 = vadd.f32 %v2388_v32, %v2060_v34  ;;  %v2604_v37 = vpop.f32.mrb[33].mxu1  ;;  %2074 = sbr.rel (%p2397_p10) target bundleno = 3460 (0xd84), region = 92 }
 0xac6   : > { %v2063_v39 = vpop.f32.mrb[34].mxu1 }
 0xac7   : > { %v2067_v40 = vadd.f32 %v2061_v35, %v3226_v33  ;;  %v2064_v61 = vadd.f32 %v2388_v32, %v2063_v39  ;;  %v2605_v41 = vpop.f32.mrb[35].mxu1 }
 0xac9   : > { %2069 = vst.msk [vmem:[#allocation2] sm:$0xff] %vm709_vm3, %v2067_v40  ;;  %v2068_v7 = vadd.f32 %v2064_v61, %v3229_v36 }
 0xacb   : > { %2070 = vst.msk [vmem:[#allocation2 + $0x8] sm:$0xff] %vm709_vm3, %v2068_v7 }
 0xad2   : > { %v2077_v56 = vld [vmem:[%s2076_s23] sm:$0x1]  ;;  %v2399_v42 = vld [vmem:[%s2256_s16 + $0x8] sm:$0x1] }
 0xad3   : > { %v2083_v8 = vrot.slane %v2399_v42, 7 }
 0xad5   : > { %v2086_v33 = vsel %vm2085_vm9, %v2077_v56, %v2083_v8 }
 0xad6   : > { %v2090_v38 = vsel %vm2089_vm10, %v2086_v33, 0.0 }
 0xad7   : > { %2091 = vadd.xlane.f32.xlu0 %v2090_v38 }
 0xb64   : > { %v2092_v43 = vpop.xlane.xlu0 %2091 }
 0xb65   : > { %v2093_v36 = vmul.f32 0.03125, %v2092_v43 }
 0xb67   : > { %v2094_v44 = vsub.f32 %v2086_v33, %v2093_v36 }
 0xb69   : > { %v2095_v45 = vmul.f32 %v2094_v44, %v2094_v44 }
 0xb6b   : > { %v2096_v46 = vsel %vm2089_vm10, %v2095_v45, 0.0 }
 0xb6c   : > { %2097 = vadd.xlane.f32.xlu0 %v2096_v46 }
 0xbf9   : > { %v2098_v53 = vpop.xlane.xlu0 %2097 }
 0xbfa   : > { %v2099_v54 = vmul.f32 0.03125, %v2098_v53 }
 0xbfc   : > { %v2100_v57 = vadd.f32 1e-05, %v2099_v54 }
 0xbfe   : > { %2722 = vrsqrt.f32 %v2100_v57 }
 0xc08   : > { %v2723_v58 = vpop.eup %2722 }
 0xc09   : > { %v2102_v62 = vmul.f32 %v2723_v58, %v2094_v44 }
 0xc0b   : > { %v2109_v1 = vmul.f32 %v2400_v60, %v2102_v62 }
 0xc0d   : > { %v2116_v2 = vadd.f32 %v2401_v0, %v2109_v1 }
 0xc0f   : > { %v2117_v3 = vpack.c.bf16 %v2116_v2, %v2116_v2 }
 0xc11   : > { %2611 = vmatmul.mubr.msk.bf16.vlgmr.msra.gmra.mrb[0].mxu0 %vm709_vm3, %v2117_v3 }
 0xce4   : > { %v2171_v4 = vpop.f32.mrb[0].mxu0 }
 0xce5   : > { %v2612_v5 = vpop.f32.mrb[1].mxu0  ;;  %v2177_v6 = vmul.f32 %v2171_v4, %v2171_v4 }
 0xce6   : > { %v2174_v9 = vpop.f32.mrb[2].mxu0 }
 0xce7   : > { %v2613_v10 = vpop.f32.mrb[3].mxu0  ;;  %v2178_v11 = vsel %vm2089_vm10, %v2177_v6, 0.0 }
 0xce8   : > { %2179 = vadd.xlane.f32.xlu1 %v2178_v11 }
 0xd75   : > { %v2180_v12 = vpop.xlane.xlu1 %2179 }
 0xd76   : > { %2724 = vrsqrt.f32 %v2180_v12 }
 0xd80   : > { %v2725_v13 = vpop.eup %2724 }
 0xd81   : > { %v2182_v59 = vmul.f32 %v2725_v13, %v2171_v4 }
 0xd83   : > { %2183 = vst.msk [vmem:[#allocation6] sm:$0x3] %vm2089_vm10, %v2182_v59 }
 0xd84 PF: > { %p2618_p11 = scmp.eq.s32.totalorder %s2892_s0, 1  ;;  %s2792_s15 = smov [#allocation6]  }
 0xd85   : > { %s2191_s25 = sshll.u32 %s2792_s15, 4  ;;  %s2192_s25 = int_to_ptr.vmem [resolvable:$true] %s2191_s25 }
 0xd86   : > { %s2738_s27 = scalar_lea.vmem %s2192_s25, 32  ;;  %p2745_p1 = scmp.lt.s32.totalorder %s2192_s25, %s2192_s25 }
 0xd87   : > { %p2739_p12 = scmp.ne.s32.totalorder %s2192_s25, %s2738_s27  ;;  %p2746_p2 = scmp.lt.s32.totalorder %s2738_s27, %s2738_s27 }
 0xd89   : > { %p2740_p13 = pnand %p2739_p12, %p2618_p11  ;;  %p2747_p3 = por %p2746_p2, %p2745_p1 }
 0xd8b   : > { %p2741_p0 = pneg %p2740_p13 }
 0xd8d   : > { %p2748_p4 = pnand %p2747_p3, %p2741_p0 }
 0xd8f   : > { %2751 = shalt.err (!%p2748_p4)
}
 0xd90   : > { %s3371_s6 = sld [smem:[#allocation19_spill]] }
 0xd96   : > { %s2752_s11 = scalar_lea.hbm %s3371_s6, 32 }
 0xd97   : > { %p2753_p5 = scmp.ne.s32.totalorder %s3371_s6, %s2752_s11  ;;  %p2758_p8 = scmp.lt.u32.totalorder %s2752_s11, %s3371_s6 }
 0xd99   : > { %p2754_p6 = pnand %p2753_p5, %p2618_p11 }
 0xd9b   : > { %p2755_p7 = pneg %p2754_p6 }
 0xd9d   : > { %p2760_p9 = pnand %p2758_p8, %p2755_p7 }
 0xd9f   : > { %2763 = shalt.err (!%p2760_p9)
}
 0xda0   : > { %2615 = dma.vmem_to_hbm [thread:$0]  (%p2618_p11), %s2192_s25, 32, %s3371_s6, [#allocation7]  }
 0xda1   : > { %2771 = dma.done.wait (%p2618_p11), [#allocation7], 32  }
 0xda2   : > { %2773 = vsyncadd (%p2618_p11), [#allocation7], 4294967264 }
 0xda3 PF: > { %s3372_s19 = sld [smem:[#allocation10_spill]] }
 0xda9   : > { %s34_s29 = sadd.s32 1, %s3372_s19  }
 0xdaa   : > { %p31_p10 = scmp.ge.s32.totalorder %s34_s29, 4  }
 0xdac   :  { %33 = sbr.rel (!%p31_p10) target bundleno = 24 (0x18), region = 154 }
 0xdb3   :  { %2204 = vsyncpa [#allocation7], 1 }
 0xdb4   :  { %2206 = vsyncpa [#allocation7 + $0x1], 1 }

</bundles_post_ra>
